<compile_context>
chip_gen: v6e
topology: v6e:2x2x1
jax: 0.10.0
libtpu: 0.0.40
codegen_flags: <defaults>
</compile_context>

<pallas_src>
import numpy as np
import jax
import jax.numpy as jnp
from jax import lax
from jax.experimental import pallas as pl
from jax.experimental.pallas import tpu as pltpu


def _round_up(x, m):
    return (x + m - 1) // m * m


# ----------------------------- Pallas kernel ------------------------------

def _make_kernel(tap_offsets, cin_p, s_out, n_valid, neg_slope=0.01, eps=1e-5):
    inv_n = 1.0 / float(n_valid)

    def kernel(x_ref, w_ref, gb_ref, mask_ref, o_ref, col_ref):
        # x_ref:    (1, Cin_p, S_in)    bf16  -- zero-padded, flattened (D,H,W) slab
        # w_ref:    (Cout_t, T*Cin_p)   bf16  -- fused lane-dense weight matrix (tap-major)
        # gb_ref:   (Cout_t, 2)         f32   -- [:,0]=gamma, [:,1]=beta
        # mask_ref: (1, S_out)          f32   -- 1.0 on valid conv-output slab positions
        # o_ref:    (1, Cout_t, S_out)  bf16
        # col_ref:  (T*Cin_p, S_out)    bf16  -- VMEM im2col scratch
        #
        # Fused im2col: each tap is one static lane-offset slice of the VMEM-resident slab,
        # copied ONCE into the scratch stack (rebuilt every step so megacore splitting of
        # either parallel grid axis cannot leave a core with a stale/uninitialized stack).
        for t, off in enumerate(tap_offsets):
            col_ref[t * cin_p:(t + 1) * cin_p, :] = x_ref[0, :, off:off + s_out]

        # Single MXU matmul, K = T*Cin_p, f32 accumulation.
        acc = jnp.dot(w_ref[...], col_ref[...],
                      preferred_element_type=jnp.float32)          # (Cout_t, S_out) f32

        # GroupNorm with num_groups == num_channels: per-channel stats over the *valid*
        # slab positions only (valid count is a static constant).  Centered two-pass
        # variance; `diff` is reused by the normalization.
        mask = mask_ref[...]                                       # (1, S_out)
        mean = jnp.sum(acc * mask, axis=1, keepdims=True) * inv_n  # (Cout_t, 1)
        diff = acc - mean
        var = jnp.sum(diff * diff * mask, axis=1, keepdims=True) * inv_n
        gamma = gb_ref[:, 0:1]
        beta = gb_ref[:, 1:2]
        y = diff * lax.rsqrt(var + eps) * gamma + beta

        # LeakyReLU (PyTorch default negative_slope = 0.01) as a single VPU max.
        y = jnp.maximum(y, neg_slope * y)

        o_ref[0] = y.astype(o_ref.dtype)                           # bf16 store

    return kernel


# ------------------------------ glue (JAX) --------------------------------

def basic_conv_forward(x, weight, gamma, beta, *,
                       kernel_size, stride=1, padding=0, dilation=1):
    """BasicConv forward.  x: (N, Cin, D, H, W); weight: (Cout, Cin, k, k, k).
    Conv bias is intentionally omitted: it cancels exactly under per-channel GroupNorm."""
    N, Cin, D, H, W = x.shape
    Cout = weight.shape[0]
    k, st, pd, dl = kernel_size, stride, padding, dilation
    assert weight.shape[1] == Cin  # TODO(synk): Conv3d groups > 1 not implemented

    Do = (D + 2 * pd - dl * (k - 1) - 1) // st + 1
    Ho = (H + 2 * pd - dl * (k - 1) - 1) // st + 1
    Wo = (W + 2 * pd - dl * (k - 1) - 1) // st + 1
    Dp, Hp, Wp = D + 2 * pd, H + 2 * pd, W + 2 * pd

    # Flat-slab geometry: output (d,h,w) sits at flat index (d*st)*Hp*Wp + (h*st)*Wp + w*st
    # of the padded input; tap (dz,dy,dx) adds the static offset dz*dl*Hp*Wp + dy*dl*Wp + dx*dl.
    reshape_need = ((Do - 1) * st + 1) * Hp * Wp           # slab prefix needed to un-flatten
    S_out = _round_up(reshape_need, 128)                   # lane-dense kernel output width
    max_off = (k - 1) * dl * (Hp * Wp + Wp + 1)
    S_in = _round_up(S_out + max_off, 128)                 # slab zero-padded so tap over-reads
    Cin_p = _round_up(Cin, 8)                              # stay in-bounds (no VMEM OOB check)
    Cout_p = _round_up(Cout, 8)
    T = k * k * k
    K_p = T * Cin_p                                        # fused contraction depth

    # Cout tile for the second parallel grid axis (per-channel GN stats are independent).
    if Cout_p <= 32:
        cout_tile = Cout_p
    elif Cout_p % 32 == 0:
        cout_tile = 32
    elif Cout_p % 16 == 0:
        cout_tile = 16
    else:
        cout_tile = 8

    tap_offsets = [dz * dl * Hp * Wp + dy * dl * Wp + dx * dl
                   for dz in range(k) for dy in range(k) for dx in range(k)]

    # Wrapper-side data prep: zero-pad + flatten the input once (no 27x im2col through HBM).
    xp = jnp.pad(x, ((0, 0), (0, Cin_p - Cin), (pd, pd), (pd, pd), (pd, pd)))
    xf = xp.reshape(N, Cin_p, Dp * Hp * Wp)
    xf = jnp.pad(xf, ((0, 0), (0, 0), (0, S_in - Dp * Hp * Wp))).astype(jnp.bfloat16)

    # Fused lane-dense weight matrix: column index = tap*Cin_p + cin (tap-major, dz,dy,dx).
    w_m = jnp.transpose(weight, (0, 2, 3, 4, 1))           # (Cout, k, k, k, Cin)
    w_m = jnp.pad(w_m, ((0, Cout_p - Cout), (0, 0), (0, 0), (0, 0), (0, Cin_p - Cin)))
    w_m = w_m.reshape(Cout_p, K_p).astype(jnp.bfloat16)

    gb = jnp.stack([jnp.pad(gamma, (0, Cout_p - Cout)),
                    jnp.pad(beta, (0, Cout_p - Cout))], axis=1).astype(jnp.float32)

    # Mask of valid conv-output positions inside the slab (static count).
    dd, hh, ww = np.meshgrid(np.arange(Do), np.arange(Ho), np.arange(Wo), indexing="ij")
    valid_idx = (dd * st * Hp * Wp + hh * st * Wp + ww * st).ravel()
    mask_np = np.zeros((1, S_out), np.float32)
    mask_np[0, valid_idx] = 1.0
    mask = jnp.asarray(mask_np)
    n_valid = Do * Ho * Wo

    kernel = _make_kernel(tap_offsets, Cin_p, S_out, n_valid)

    out_full = pl.pallas_call(
        kernel,
        out_shape=jax.ShapeDtypeStruct((N, Cout_p, S_out), jnp.bfloat16),
        grid_spec=pltpu.PrefetchScalarGridSpec(
            num_scalar_prefetch=0,
            grid=(N, Cout_p // cout_tile),
            in_specs=[
                pl.BlockSpec((1, Cin_p, S_in), lambda n, c: (n, 0, 0)),
                pl.BlockSpec((cout_tile, K_p), lambda n, c: (c, 0)),
                pl.BlockSpec((cout_tile, 2), lambda n, c: (c, 0)),
                pl.BlockSpec((1, S_out), lambda n, c: (0, 0)),
            ],
            out_specs=pl.BlockSpec((1, cout_tile, S_out), lambda n, c: (n, c, 0)),
            scratch_shapes=[pltpu.VMEM((K_p, S_out), jnp.bfloat16)],
        ),
        compiler_params=pltpu.CompilerParams(
            dimension_semantics=("parallel", "parallel"),
            vmem_limit_bytes=32 * 1024 * 1024,
        ),
    )(xf, w_m, gb, mask)

    # Un-flatten the bf16 slab and keep only valid output positions -> NCDHW.
    o = out_full[:, :Cout, :reshape_need].reshape(N, Cout, (Do - 1) * st + 1, Hp, Wp)
    o = o[:, :, ::st, :(Ho - 1) * st + 1:st, :(Wo - 1) * st + 1:st]
    return o.astype(x.dtype)


# ------------------------------ reference ---------------------------------

def reference(x, weight, bias, gamma, beta, *, stride, padding, dilation):
    y = lax.conv_general_dilated(
        x, weight,
        window_strides=(stride,) * 3,
        padding=[(padding, padding)] * 3,
        rhs_dilation=(dilation,) * 3,
        dimension_numbers=("NCDHW", "OIDHW", "NCDHW"),
        precision=lax.Precision.HIGHEST)
    y = y + bias.reshape(1, -1, 1, 1, 1)          # cancels under per-channel GroupNorm
    mean = y.mean(axis=(2, 3, 4), keepdims=True)
    var = ((y - mean) ** 2).mean(axis=(2, 3, 4), keepdims=True)
    y = (y - mean) / jnp.sqrt(var + 1e-5)
    y = y * gamma.reshape(1, -1, 1, 1, 1) + beta.reshape(1, -1, 1, 1, 1)
    return jnp.where(y >= 0, y, 0.01 * y)


# --------------------------------- main ------------------------------------

if __name__ == "__main__":
    key = jax.random.PRNGKey(0)
    kx, kw, kb, kg, kbe = jax.random.split(key, 5)

    # BasicConv(in_planes=4, out_planes=8, kernel_size=3, stride=1, padding=1)
    N, Cin, Cout = 2, 4, 8
    D = H = W = 8
    ks, stride, padding, dilation = 3, 1, 1, 1

    x = jax.random.normal(kx, (N, Cin, D, H, W), jnp.float32)

    # Deterministic parameter init (Conv3d-style uniform fan-in bound; GN affine ~1/0).
    fan_in = Cin * ks ** 3
    bound = 1.0 / np.sqrt(fan_in)
    weight = jax.random.uniform(kw, (Cout, Cin, ks, ks, ks), jnp.float32, -bound, bound)
    bias = jax.random.uniform(kb, (Cout,), jnp.float32, -bound, bound)   # reference only
    gamma = 1.0 + 0.1 * jax.random.normal(kg, (Cout,), jnp.float32)
    beta = 0.1 * jax.random.normal(kbe, (Cout,), jnp.float32)

    out = basic_conv_forward(x, weight, gamma, beta,
                             kernel_size=ks, stride=stride,
                             padding=padding, dilation=dilation)
    jax.block_until_ready(out)

    ref = reference(x, weight, bias, gamma, beta,
                    stride=stride, padding=padding, dilation=dilation)
    np.testing.assert_allclose(np.asarray(out), np.asarray(ref), atol=2e-2, rtol=2e-2)

    print("KERNEL_OK")
</pallas_src>

<mosaic_0001>
module attributes {stable_mosaic.version = 11 : i64} {
  func.func @kernel(%arg0: i32, %arg1: i32, %arg2: memref<1x8x1152xbf16, #tpu.memory_space<vmem>>, %arg3: memref<8x216xbf16, #tpu.memory_space<vmem>>, %arg4: memref<8x2xf32, #tpu.memory_space<vmem>>, %arg5: memref<1x896xf32, #tpu.memory_space<vmem>>, %arg6: memref<1x8x896xbf16, #tpu.memory_space<vmem>>, %arg7: memref<216x896xbf16, #tpu.memory_space<vmem>>) attributes {dimension_semantics = [#tpu.dimension_semantics<parallel>, #tpu.dimension_semantics<parallel>], iteration_bounds = array<i64: 2, 1>, scalar_prefetch = 0 : i64, scratch_operands = 1 : i64, tpu.core_type = #tpu.core_type<tc>, window_params = [{transform_indices = @transform_0, window_bounds = array<i64: 1, 8, 1152>}, {transform_indices = @transform_1, window_bounds = array<i64: 8, 216>}, {transform_indices = @transform_2, window_bounds = array<i64: 8, 2>}, {pipeline_mode = #tpu.pipeline_mode<synchronous>, transform_indices = @transform_3, window_bounds = array<i64: 1, 896>}, {transform_indices = @transform_4, window_bounds = array<i64: 1, 8, 896>}]} {
    %c0 = arith.constant 0 : index
    %c0_0 = arith.constant 0 : index
    %c0_1 = arith.constant 0 : index
    %0 = vector.load %arg2[%c0, %c0_0, %c0_1] : memref<1x8x1152xbf16, #tpu.memory_space<vmem>>, vector<1x8x896xbf16>
    %1 = vector.shape_cast %0 : vector<1x8x896xbf16> to vector<8x896xbf16>
    %c0_2 = arith.constant 0 : index
    %c0_3 = arith.constant 0 : index
    %2 = vector.load %arg7[%c0_2, %c0_3] : memref<216x896xbf16, #tpu.memory_space<vmem>>, vector<8x896xbf16>
    tpu.vector_store %arg7[%c0_2, %c0_3], %1 {strides = array<i32>} : memref<216x896xbf16, #tpu.memory_space<vmem>>, vector<8x896xbf16>,
    %c0_4 = arith.constant 0 : index
    %c0_5 = arith.constant 0 : index
    %c1 = arith.constant 1 : index
    %3 = vector.load %arg2[%c0_4, %c0_5, %c1] : memref<1x8x1152xbf16, #tpu.memory_space<vmem>>, vector<1x8x896xbf16>
    %4 = vector.shape_cast %3 : vector<1x8x896xbf16> to vector<8x896xbf16>
    %c8 = arith.constant 8 : index
    %c0_6 = arith.constant 0 : index
    %5 = vector.load %arg7[%c8, %c0_6] : memref<216x896xbf16, #tpu.memory_space<vmem>>, vector<8x896xbf16>
    tpu.vector_store %arg7[%c8, %c0_6], %4 {strides = array<i32>} : memref<216x896xbf16, #tpu.memory_space<vmem>>, vector<8x896xbf16>,
    %c0_7 = arith.constant 0 : index
    %c0_8 = arith.constant 0 : index
    %c2 = arith.constant 2 : index
    %6 = vector.load %arg2[%c0_7, %c0_8, %c2] : memref<1x8x1152xbf16, #tpu.memory_space<vmem>>, vector<1x8x896xbf16>
    %7 = vector.shape_cast %6 : vector<1x8x896xbf16> to vector<8x896xbf16>
    %c16 = arith.constant 16 : index
    %c0_9 = arith.constant 0 : index
    %8 = vector.load %arg7[%c16, %c0_9] : memref<216x896xbf16, #tpu.memory_space<vmem>>, vector<8x896xbf16>
    tpu.vector_store %arg7[%c16, %c0_9], %7 {strides = array<i32>} : memref<216x896xbf16, #tpu.memory_space<vmem>>, vector<8x896xbf16>,
    %c0_10 = arith.constant 0 : index
    %c0_11 = arith.constant 0 : index
    %c10 = arith.constant 10 : index
    %9 = vector.load %arg2[%c0_10, %c0_11, %c10] : memref<1x8x1152xbf16, #tpu.memory_space<vmem>>, vector<1x8x896xbf16>
    %10 = vector.shape_cast %9 : vector<1x8x896xbf16> to vector<8x896xbf16>
    %c24 = arith.constant 24 : index
    %c0_12 = arith.constant 0 : index
    %11 = vector.load %arg7[%c24, %c0_12] : memref<216x896xbf16, #tpu.memory_space<vmem>>, vector<8x896xbf16>
    tpu.vector_store %arg7[%c24, %c0_12], %10 {strides = array<i32>} : memref<216x896xbf16, #tpu.memory_space<vmem>>, vector<8x896xbf16>,
    %c0_13 = arith.constant 0 : index
    %c0_14 = arith.constant 0 : index
    %c11 = arith.constant 11 : index
    %12 = vector.load %arg2[%c0_13, %c0_14, %c11] : memref<1x8x1152xbf16, #tpu.memory_space<vmem>>, vector<1x8x896xbf16>
    %13 = vector.shape_cast %12 : vector<1x8x896xbf16> to vector<8x896xbf16>
    %c32 = arith.constant 32 : index
    %c0_15 = arith.constant 0 : index
    %14 = vector.load %arg7[%c32, %c0_15] : memref<216x896xbf16, #tpu.memory_space<vmem>>, vector<8x896xbf16>
    tpu.vector_store %arg7[%c32, %c0_15], %13 {strides = array<i32>} : memref<216x896xbf16, #tpu.memory_space<vmem>>, vector<8x896xbf16>,
    %c0_16 = arith.constant 0 : index
    %c0_17 = arith.constant 0 : index
    %c12 = arith.constant 12 : index
    %15 = vector.load %arg2[%c0_16, %c0_17, %c12] : memref<1x8x1152xbf16, #tpu.memory_space<vmem>>, vector<1x8x896xbf16>
    %16 = vector.shape_cast %15 : vector<1x8x896xbf16> to vector<8x896xbf16>
    %c40 = arith.constant 40 : index
    %c0_18 = arith.constant 0 : index
    %17 = vector.load %arg7[%c40, %c0_18] : memref<216x896xbf16, #tpu.memory_space<vmem>>, vector<8x896xbf16>
    tpu.vector_store %arg7[%c40, %c0_18], %16 {strides = array<i32>} : memref<216x896xbf16, #tpu.memory_space<vmem>>, vector<8x896xbf16>,
    %c0_19 = arith.constant 0 : index
    %c0_20 = arith.constant 0 : index
    %c20 = arith.constant 20 : index
    %18 = vector.load %arg2[%c0_19, %c0_20, %c20] : memref<1x8x1152xbf16, #tpu.memory_space<vmem>>, vector<1x8x896xbf16>
    %19 = vector.shape_cast %18 : vector<1x8x896xbf16> to vector<8x896xbf16>
    %c48 = arith.constant 48 : index
    %c0_21 = arith.constant 0 : index
    %20 = vector.load %arg7[%c48, %c0_21] : memref<216x896xbf16, #tpu.memory_space<vmem>>, vector<8x896xbf16>
    tpu.vector_store %arg7[%c48, %c0_21], %19 {strides = array<i32>} : memref<216x896xbf16, #tpu.memory_space<vmem>>, vector<8x896xbf16>,
    %c0_22 = arith.constant 0 : index
    %c0_23 = arith.constant 0 : index
    %c21 = arith.constant 21 : index
    %21 = vector.load %arg2[%c0_22, %c0_23, %c21] : memref<1x8x1152xbf16, #tpu.memory_space<vmem>>, vector<1x8x896xbf16>
    %22 = vector.shape_cast %21 : vector<1x8x896xbf16> to vector<8x896xbf16>
    %c56 = arith.constant 56 : index
    %c0_24 = arith.constant 0 : index
    %23 = vector.load %arg7[%c56, %c0_24] : memref<216x896xbf16, #tpu.memory_space<vmem>>, vector<8x896xbf16>
    tpu.vector_store %arg7[%c56, %c0_24], %22 {strides = array<i32>} : memref<216x896xbf16, #tpu.memory_space<vmem>>, vector<8x896xbf16>,
    %c0_25 = arith.constant 0 : index
    %c0_26 = arith.constant 0 : index
    %c22 = arith.constant 22 : index
    %24 = vector.load %arg2[%c0_25, %c0_26, %c22] : memref<1x8x1152xbf16, #tpu.memory_space<vmem>>, vector<1x8x896xbf16>
    %25 = vector.shape_cast %24 : vector<1x8x896xbf16> to vector<8x896xbf16>
    %c64 = arith.constant 64 : index
    %c0_27 = arith.constant 0 : index
    %26 = vector.load %arg7[%c64, %c0_27] : memref<216x896xbf16, #tpu.memory_space<vmem>>, vector<8x896xbf16>
    tpu.vector_store %arg7[%c64, %c0_27], %25 {strides = array<i32>} : memref<216x896xbf16, #tpu.memory_space<vmem>>, vector<8x896xbf16>,
    %c0_28 = arith.constant 0 : index
    %c0_29 = arith.constant 0 : index
    %c100 = arith.constant 100 : index
    %27 = vector.load %arg2[%c0_28, %c0_29, %c100] : memref<1x8x1152xbf16, #tpu.memory_space<vmem>>, vector<1x8x896xbf16>
    %28 = vector.shape_cast %27 : vector<1x8x896xbf16> to vector<8x896xbf16>
    %c72 = arith.constant 72 : index
    %c0_30 = arith.constant 0 : index
    %29 = vector.load %arg7[%c72, %c0_30] : memref<216x896xbf16, #tpu.memory_space<vmem>>, vector<8x896xbf16>
    tpu.vector_store %arg7[%c72, %c0_30], %28 {strides = array<i32>} : memref<216x896xbf16, #tpu.memory_space<vmem>>, vector<8x896xbf16>,
    %c0_31 = arith.constant 0 : index
    %c0_32 = arith.constant 0 : index
    %c101 = arith.constant 101 : index
    %30 = vector.load %arg2[%c0_31, %c0_32, %c101] : memref<1x8x1152xbf16, #tpu.memory_space<vmem>>, vector<1x8x896xbf16>
    %31 = vector.shape_cast %30 : vector<1x8x896xbf16> to vector<8x896xbf16>
    %c80 = arith.constant 80 : index
    %c0_33 = arith.constant 0 : index
    %32 = vector.load %arg7[%c80, %c0_33] : memref<216x896xbf16, #tpu.memory_space<vmem>>, vector<8x896xbf16>
    tpu.vector_store %arg7[%c80, %c0_33], %31 {strides = array<i32>} : memref<216x896xbf16, #tpu.memory_space<vmem>>, vector<8x896xbf16>,
    %c0_34 = arith.constant 0 : index
    %c0_35 = arith.constant 0 : index
    %c102 = arith.constant 102 : index
    %33 = vector.load %arg2[%c0_34, %c0_35, %c102] : memref<1x8x1152xbf16, #tpu.memory_space<vmem>>, vector<1x8x896xbf16>
    %34 = vector.shape_cast %33 : vector<1x8x896xbf16> to vector<8x896xbf16>
    %c88 = arith.constant 88 : index
    %c0_36 = arith.constant 0 : index
    %35 = vector.load %arg7[%c88, %c0_36] : memref<216x896xbf16, #tpu.memory_space<vmem>>, vector<8x896xbf16>
    tpu.vector_store %arg7[%c88, %c0_36], %34 {strides = array<i32>} : memref<216x896xbf16, #tpu.memory_space<vmem>>, vector<8x896xbf16>,
    %c0_37 = arith.constant 0 : index
    %c0_38 = arith.constant 0 : index
    %c110 = arith.constant 110 : index
    %36 = vector.load %arg2[%c0_37, %c0_38, %c110] : memref<1x8x1152xbf16, #tpu.memory_space<vmem>>, vector<1x8x896xbf16>
    %37 = vector.shape_cast %36 : vector<1x8x896xbf16> to vector<8x896xbf16>
    %c96 = arith.constant 96 : index
    %c0_39 = arith.constant 0 : index
    %38 = vector.load %arg7[%c96, %c0_39] : memref<216x896xbf16, #tpu.memory_space<vmem>>, vector<8x896xbf16>
    tpu.vector_store %arg7[%c96, %c0_39], %37 {strides = array<i32>} : memref<216x896xbf16, #tpu.memory_space<vmem>>, vector<8x896xbf16>,
    %c0_40 = arith.constant 0 : index
    %c0_41 = arith.constant 0 : index
    %c111 = arith.constant 111 : index
    %39 = vector.load %arg2[%c0_40, %c0_41, %c111] : memref<1x8x1152xbf16, #tpu.memory_space<vmem>>, vector<1x8x896xbf16>
    %40 = vector.shape_cast %39 : vector<1x8x896xbf16> to vector<8x896xbf16>
    %c104 = arith.constant 104 : index
    %c0_42 = arith.constant 0 : index
    %41 = vector.load %arg7[%c104, %c0_42] : memref<216x896xbf16, #tpu.memory_space<vmem>>, vector<8x896xbf16>
    tpu.vector_store %arg7[%c104, %c0_42], %40 {strides = array<i32>} : memref<216x896xbf16, #tpu.memory_space<vmem>>, vector<8x896xbf16>,
    %c0_43 = arith.constant 0 : index
    %c0_44 = arith.constant 0 : index
    %c112 = arith.constant 112 : index
    %42 = vector.load %arg2[%c0_43, %c0_44, %c112] : memref<1x8x1152xbf16, #tpu.memory_space<vmem>>, vector<1x8x896xbf16>
    %43 = vector.shape_cast %42 : vector<1x8x896xbf16> to vector<8x896xbf16>
    %c112_45 = arith.constant 112 : index
    %c0_46 = arith.constant 0 : index
    %44 = vector.load %arg7[%c112_45, %c0_46] : memref<216x896xbf16, #tpu.memory_space<vmem>>, vector<8x896xbf16>
    tpu.vector_store %arg7[%c112_45, %c0_46], %43 {strides = array<i32>} : memref<216x896xbf16, #tpu.memory_space<vmem>>, vector<8x896xbf16>,
    %c0_47 = arith.constant 0 : index
    %c0_48 = arith.constant 0 : index
    %c120 = arith.constant 120 : index
    %45 = vector.load %arg2[%c0_47, %c0_48, %c120] : memref<1x8x1152xbf16, #tpu.memory_space<vmem>>, vector<1x8x896xbf16>
    %46 = vector.shape_cast %45 : vector<1x8x896xbf16> to vector<8x896xbf16>
    %c120_49 = arith.constant 120 : index
    %c0_50 = arith.constant 0 : index
    %47 = vector.load %arg7[%c120_49, %c0_50] : memref<216x896xbf16, #tpu.memory_space<vmem>>, vector<8x896xbf16>
    tpu.vector_store %arg7[%c120_49, %c0_50], %46 {strides = array<i32>} : memref<216x896xbf16, #tpu.memory_space<vmem>>, vector<8x896xbf16>,
    %c0_51 = arith.constant 0 : index
    %c0_52 = arith.constant 0 : index
    %c121 = arith.constant 121 : index
    %48 = vector.load %arg2[%c0_51, %c0_52, %c121] : memref<1x8x1152xbf16, #tpu.memory_space<vmem>>, vector<1x8x896xbf16>
    %49 = vector.shape_cast %48 : vector<1x8x896xbf16> to vector<8x896xbf16>
    %c128 = arith.constant 128 : index
    %c0_53 = arith.constant 0 : index
    %50 = vector.load %arg7[%c128, %c0_53] : memref<216x896xbf16, #tpu.memory_space<vmem>>, vector<8x896xbf16>
    tpu.vector_store %arg7[%c128, %c0_53], %49 {strides = array<i32>} : memref<216x896xbf16, #tpu.memory_space<vmem>>, vector<8x896xbf16>,
    %c0_54 = arith.constant 0 : index
    %c0_55 = arith.constant 0 : index
    %c122 = arith.constant 122 : index
    %51 = vector.load %arg2[%c0_54, %c0_55, %c122] : memref<1x8x1152xbf16, #tpu.memory_space<vmem>>, vector<1x8x896xbf16>
    %52 = vector.shape_cast %51 : vector<1x8x896xbf16> to vector<8x896xbf16>
    %c136 = arith.constant 136 : index
    %c0_56 = arith.constant 0 : index
    %53 = vector.load %arg7[%c136, %c0_56] : memref<216x896xbf16, #tpu.memory_space<vmem>>, vector<8x896xbf16>
    tpu.vector_store %arg7[%c136, %c0_56], %52 {strides = array<i32>} : memref<216x896xbf16, #tpu.memory_space<vmem>>, vector<8x896xbf16>,
    %c0_57 = arith.constant 0 : index
    %c0_58 = arith.constant 0 : index
    %c200 = arith.constant 200 : index
    %54 = vector.load %arg2[%c0_57, %c0_58, %c200] : memref<1x8x1152xbf16, #tpu.memory_space<vmem>>, vector<1x8x896xbf16>
    %55 = vector.shape_cast %54 : vector<1x8x896xbf16> to vector<8x896xbf16>
    %c144 = arith.constant 144 : index
    %c0_59 = arith.constant 0 : index
    %56 = vector.load %arg7[%c144, %c0_59] : memref<216x896xbf16, #tpu.memory_space<vmem>>, vector<8x896xbf16>
    tpu.vector_store %arg7[%c144, %c0_59], %55 {strides = array<i32>} : memref<216x896xbf16, #tpu.memory_space<vmem>>, vector<8x896xbf16>,
    %c0_60 = arith.constant 0 : index
    %c0_61 = arith.constant 0 : index
    %c201 = arith.constant 201 : index
    %57 = vector.load %arg2[%c0_60, %c0_61, %c201] : memref<1x8x1152xbf16, #tpu.memory_space<vmem>>, vector<1x8x896xbf16>
    %58 = vector.shape_cast %57 : vector<1x8x896xbf16> to vector<8x896xbf16>
    %c152 = arith.constant 152 : index
    %c0_62 = arith.constant 0 : index
    %59 = vector.load %arg7[%c152, %c0_62] : memref<216x896xbf16, #tpu.memory_space<vmem>>, vector<8x896xbf16>
    tpu.vector_store %arg7[%c152, %c0_62], %58 {strides = array<i32>} : memref<216x896xbf16, #tpu.memory_space<vmem>>, vector<8x896xbf16>,
    %c0_63 = arith.constant 0 : index
    %c0_64 = arith.constant 0 : index
    %c202 = arith.constant 202 : index
    %60 = vector.load %arg2[%c0_63, %c0_64, %c202] : memref<1x8x1152xbf16, #tpu.memory_space<vmem>>, vector<1x8x896xbf16>
    %61 = vector.shape_cast %60 : vector<1x8x896xbf16> to vector<8x896xbf16>
    %c160 = arith.constant 160 : index
    %c0_65 = arith.constant 0 : index
    %62 = vector.load %arg7[%c160, %c0_65] : memref<216x896xbf16, #tpu.memory_space<vmem>>, vector<8x896xbf16>
    tpu.vector_store %arg7[%c160, %c0_65], %61 {strides = array<i32>} : memref<216x896xbf16, #tpu.memory_space<vmem>>, vector<8x896xbf16>,
    %c0_66 = arith.constant 0 : index
    %c0_67 = arith.constant 0 : index
    %c210 = arith.constant 210 : index
    %63 = vector.load %arg2[%c0_66, %c0_67, %c210] : memref<1x8x1152xbf16, #tpu.memory_space<vmem>>, vector<1x8x896xbf16>
    %64 = vector.shape_cast %63 : vector<1x8x896xbf16> to vector<8x896xbf16>
    %c168 = arith.constant 168 : index
    %c0_68 = arith.constant 0 : index
    %65 = vector.load %arg7[%c168, %c0_68] : memref<216x896xbf16, #tpu.memory_space<vmem>>, vector<8x896xbf16>
    tpu.vector_store %arg7[%c168, %c0_68], %64 {strides = array<i32>} : memref<216x896xbf16, #tpu.memory_space<vmem>>, vector<8x896xbf16>,
    %c0_69 = arith.constant 0 : index
    %c0_70 = arith.constant 0 : index
    %c211 = arith.constant 211 : index
    %66 = vector.load %arg2[%c0_69, %c0_70, %c211] : memref<1x8x1152xbf16, #tpu.memory_space<vmem>>, vector<1x8x896xbf16>
    %67 = vector.shape_cast %66 : vector<1x8x896xbf16> to vector<8x896xbf16>
    %c176 = arith.constant 176 : index
    %c0_71 = arith.constant 0 : index
    %68 = vector.load %arg7[%c176, %c0_71] : memref<216x896xbf16, #tpu.memory_space<vmem>>, vector<8x896xbf16>
    tpu.vector_store %arg7[%c176, %c0_71], %67 {strides = array<i32>} : memref<216x896xbf16, #tpu.memory_space<vmem>>, vector<8x896xbf16>,
    %c0_72 = arith.constant 0 : index
    %c0_73 = arith.constant 0 : index
    %c212 = arith.constant 212 : index
    %69 = vector.load %arg2[%c0_72, %c0_73, %c212] : memref<1x8x1152xbf16, #tpu.memory_space<vmem>>, vector<1x8x896xbf16>
    %70 = vector.shape_cast %69 : vector<1x8x896xbf16> to vector<8x896xbf16>
    %c184 = arith.constant 184 : index
    %c0_74 = arith.constant 0 : index
    %71 = vector.load %arg7[%c184, %c0_74] : memref<216x896xbf16, #tpu.memory_space<vmem>>, vector<8x896xbf16>
    tpu.vector_store %arg7[%c184, %c0_74], %70 {strides = array<i32>} : memref<216x896xbf16, #tpu.memory_space<vmem>>, vector<8x896xbf16>,
    %c0_75 = arith.constant 0 : index
    %c0_76 = arith.constant 0 : index
    %c220 = arith.constant 220 : index
    %72 = vector.load %arg2[%c0_75, %c0_76, %c220] : memref<1x8x1152xbf16, #tpu.memory_space<vmem>>, vector<1x8x896xbf16>
    %73 = vector.shape_cast %72 : vector<1x8x896xbf16> to vector<8x896xbf16>
    %c192 = arith.constant 192 : index
    %c0_77 = arith.constant 0 : index
    %74 = vector.load %arg7[%c192, %c0_77] : memref<216x896xbf16, #tpu.memory_space<vmem>>, vector<8x896xbf16>
    tpu.vector_store %arg7[%c192, %c0_77], %73 {strides = array<i32>} : memref<216x896xbf16, #tpu.memory_space<vmem>>, vector<8x896xbf16>,
    %c0_78 = arith.constant 0 : index
    %c0_79 = arith.constant 0 : index
    %c221 = arith.constant 221 : index
    %75 = vector.load %arg2[%c0_78, %c0_79, %c221] : memref<1x8x1152xbf16, #tpu.memory_space<vmem>>, vector<1x8x896xbf16>
    %76 = vector.shape_cast %75 : vector<1x8x896xbf16> to vector<8x896xbf16>
    %c200_80 = arith.constant 200 : index
    %c0_81 = arith.constant 0 : index
    %77 = vector.load %arg7[%c200_80, %c0_81] : memref<216x896xbf16, #tpu.memory_space<vmem>>, vector<8x896xbf16>
    tpu.vector_store %arg7[%c200_80, %c0_81], %76 {strides = array<i32>} : memref<216x896xbf16, #tpu.memory_space<vmem>>, vector<8x896xbf16>,
    %c0_82 = arith.constant 0 : index
    %c0_83 = arith.constant 0 : index
    %c222 = arith.constant 222 : index
    %78 = vector.load %arg2[%c0_82, %c0_83, %c222] : memref<1x8x1152xbf16, #tpu.memory_space<vmem>>, vector<1x8x896xbf16>
    %79 = vector.shape_cast %78 : vector<1x8x896xbf16> to vector<8x896xbf16>
    %c208 = arith.constant 208 : index
    %c0_84 = arith.constant 0 : index
    %80 = vector.load %arg7[%c208, %c0_84] : memref<216x896xbf16, #tpu.memory_space<vmem>>, vector<8x896xbf16>
    tpu.vector_store %arg7[%c208, %c0_84], %79 {strides = array<i32>} : memref<216x896xbf16, #tpu.memory_space<vmem>>, vector<8x896xbf16>,
    %c0_85 = arith.constant 0 : index
    %c0_86 = arith.constant 0 : index
    %81 = vector.load %arg3[%c0_85, %c0_86] : memref<8x216xbf16, #tpu.memory_space<vmem>>, vector<8x216xbf16>
    %c0_87 = arith.constant 0 : index
    %c0_88 = arith.constant 0 : index
    %82 = vector.load %arg7[%c0_87, %c0_88] : memref<216x896xbf16, #tpu.memory_space<vmem>>, vector<216x896xbf16>
    %cst = arith.constant dense<0.000000e+00> : vector<8x896xf32>
    %83 = tpu.matmul %81, %82, %cst {dimension_numbers = #tpu.dot_dimension_numbers<[1], [0], [0], [1], [0, 0, 1, 1], [], []>} : vector<8x216xbf16>, vector<216x896xbf16>, vector<8x896xf32> -> vector<8x896xf32>
    %c0_89 = arith.constant 0 : index
    %c0_90 = arith.constant 0 : index
    %84 = vector.load %arg5[%c0_89, %c0_90] : memref<1x896xf32, #tpu.memory_space<vmem>>, vector<1x896xf32>
    %85 = vector.broadcast %84 : vector<1x896xf32> to vector<8x896xf32>
    %86 = arith.mulf %83, %85 : vector<8x896xf32>
    %cst_91 = arith.constant dense<0.000000e+00> : vector<8xf32>
    %87 = vector.multi_reduction <add>, %86, %cst_91 [1] : vector<8x896xf32> to vector<8xf32>
    %88 = vector.shape_cast %87 : vector<8xf32> to vector<8x1xf32>
    %cst_92 = arith.constant 0.001953125 : f32
    %89 = vector.broadcast %cst_92 : f32 to vector<8x1xf32>
    %90 = arith.mulf %88, %89 : vector<8x1xf32>
    %91 = vector.broadcast %90 : vector<8x1xf32> to vector<8x896xf32>
    %92 = arith.subf %83, %91 : vector<8x896xf32>
    %93 = arith.mulf %92, %92 : vector<8x896xf32>
    %94 = vector.broadcast %84 : vector<1x896xf32> to vector<8x896xf32>
    %95 = arith.mulf %93, %94 : vector<8x896xf32>
    %cst_93 = arith.constant dense<0.000000e+00> : vector<8xf32>
    %96 = vector.multi_reduction <add>, %95, %cst_93 [1] : vector<8x896xf32> to vector<8xf32>
    %97 = vector.shape_cast %96 : vector<8xf32> to vector<8x1xf32>
    %cst_94 = arith.constant 0.001953125 : f32
    %98 = vector.broadcast %cst_94 : f32 to vector<8x1xf32>
    %99 = arith.mulf %97, %98 : vector<8x1xf32>
    %c0_95 = arith.constant 0 : index
    %c0_96 = arith.constant 0 : index
    %100 = vector.load %arg4[%c0_95, %c0_96] : memref<8x2xf32, #tpu.memory_space<vmem>>, vector<8x1xf32>
    %c0_97 = arith.constant 0 : index
    %c1_98 = arith.constant 1 : index
    %101 = vector.load %arg4[%c0_97, %c1_98] : memref<8x2xf32, #tpu.memory_space<vmem>>, vector<8x1xf32>
    %cst_99 = arith.constant 9.99999974E-6 : f32
    %102 = vector.broadcast %cst_99 : f32 to vector<8x1xf32>
    %103 = arith.addf %99, %102 : vector<8x1xf32>
    %104 = math.rsqrt %103 : vector<8x1xf32>
    %105 = vector.broadcast %104 : vector<8x1xf32> to vector<8x896xf32>
    %106 = arith.mulf %92, %105 : vector<8x896xf32>
    %107 = vector.broadcast %100 : vector<8x1xf32> to vector<8x896xf32>
    %108 = arith.mulf %106, %107 : vector<8x896xf32>
    %109 = vector.broadcast %101 : vector<8x1xf32> to vector<8x896xf32>
    %110 = arith.addf %108, %109 : vector<8x896xf32>
    %cst_100 = arith.constant 0.00999999977 : f32
    %111 = vector.broadcast %cst_100 : f32 to vector<8x896xf32>
    %112 = arith.mulf %111, %110 : vector<8x896xf32>
    %113 = arith.maximumf %110, %112 : vector<8x896xf32>
    %114 = arith.truncf %113 : vector<8x896xf32> to vector<8x896xbf16>
    %c0_101 = arith.constant 0 : index
    %c0_102 = arith.constant 0 : index
    %c0_103 = arith.constant 0 : index
    %115 = vector.load %arg6[%c0_101, %c0_102, %c0_103] : memref<1x8x896xbf16, #tpu.memory_space<vmem>>, vector<1x8x896xbf16>
    %116 = vector.shape_cast %115 : vector<1x8x896xbf16> to vector<8x896xbf16>
    %117 = vector.shape_cast %114 : vector<8x896xbf16> to vector<1x8x896xbf16>
    tpu.vector_store %arg6[%c0_101, %c0_102, %c0_103], %117 {strides = array<i32>} : memref<1x8x896xbf16, #tpu.memory_space<vmem>>, vector<1x8x896xbf16>,
    return
  }
  func.func @transform_0(%arg0: i32, %arg1: i32) -> (i32, i32, i32) {
    %c0_i32 = arith.constant 0 : i32
    %c0_i32_0 = arith.constant 0 : i32
    %c0_i32_1 = arith.constant 0 : i32
    return %arg0, %c0_i32, %c0_i32_0 : i32, i32, i32
  }
  func.func @transform_1(%arg0: i32, %arg1: i32) -> (i32, i32) {
    %c0_i32 = arith.constant 0 : i32
    %c0_i32_0 = arith.constant 0 : i32
    return %arg1, %c0_i32 : i32, i32
  }
  func.func @transform_2(%arg0: i32, %arg1: i32) -> (i32, i32) {
    %c0_i32 = arith.constant 0 : i32
    %c0_i32_0 = arith.constant 0 : i32
    return %arg1, %c0_i32 : i32, i32
  }
  func.func @transform_3(%arg0: i32, %arg1: i32) -> (i32, i32) {
    %c0_i32 = arith.constant 0 : i32
    %c0_i32_0 = arith.constant 0 : i32
    %c0_i32_1 = arith.constant 0 : i32
    return %c0_i32, %c0_i32_0 : i32, i32
  }
  func.func @transform_4(%arg0: i32, %arg1: i32) -> (i32, i32, i32) {
    %c0_i32 = arith.constant 0 : i32
    %c0_i32_0 = arith.constant 0 : i32
    return %arg0, %arg1, %c0_i32 : i32, i32, i32
  }
}

</mosaic_0001>

<bundles_post_ra>
// kernel: tpu_custom_call.1
= control target key start
LH: loop header
LB: loop body
LE: loop exit
PB: predicated region body
PF: predicated region fallthrough
CT: control target
= control target key end

     0   :  { %9 = vsyncpa [#allocation4], 0  ;;  %s3582_s0 = inlined_call_operand.hbm [shape: bf16[2,8,1152], index: 0, kind: input, shape index: {}]   ;;  %s3583_s1 = inlined_call_operand.vmem [shape: bf16[8,216], index: 1, kind: input, shape index: {}]   ;;  %s3584_s2 = inlined_call_operand.vmem [shape: f32[8,2], index: 2, kind: input, shape index: {}]   ;;  %s3585_s3 = inlined_call_operand.vmem [shape: f32[1,896], index: 3, kind: input, shape index: {}]   ;;  %s3586_s4 = inlined_call_operand.hbm [shape: bf16[2,8,896], index: 4, kind: output, shape index: {}]  }
   0x1   :  { %11 = vsyncpa [#allocation4 + $0x1], 0 }
   0x2   :  { %12 = vsyncpa [#allocation5], 0 }
   0x3   :  { %14 = vsyncpa [#allocation5 + $0x1], 0  ;;  %s2699_s15 = smov 0   ;;  %s2701_s16 = smov 0  }
   0x4   :  { %s2703_s17 = smov 0   ;;  %s2705_s18 = smov 0  }
   0x5   :  { %s2707_s19 = smov 0   ;;  %s2709_s20 = smov 0  }
   0x6 LB: > { %s2292_s21 = sadd.s32 4294967295, %s2642_s20   ;;  %s2293_s22 = sadd.s32 4294967294, %s2642_s20   ;;  %s2642_s20 = sphi %s2709_s20, %s20_s20   ;;  %s2638_s19 = sphi %s2707_s19, %s3678_s19   ;;  %s2634_s18 = sphi %s2705_s18, %s3677_s18   ;;  %s2630_s17 = sphi %s2703_s17, %s3676_s17   ;;  %s2626_s16 = sphi %s2701_s16, %s3675_s16   ;;  %s2622_s15 = sphi %s2699_s15, %s3674_s15  }
   0x7   : > { %s32_s23 = sadd.s32 1, %s2638_s19  ;;  %s39_s24 = sadd.s32 1, %s2630_s17 }
   0x8   : > { %p34_p0 = scmp.ge.s32.totalorder %s32_s23, 2  ;;  %p46_p1 = scmp.ne.s32.totalorder %s2630_s17, %s2626_s16 }
   0x9   : > { %p47_p2 = scmp.eq.s32.totalorder %s2642_s20, 0  ;;  %p52_p3 = scmp.ne.s32.totalorder %s2626_s16, %s2622_s15 }
   0xa   : > { %s3680_s23 = smov (%p34_p0, %s32_s23), 0  ;;  %p53_p5 = scmp.eq.s32.totalorder %s2292_s21, 0 }
   0xb   : > { %p2740_p4 = por %p47_p2, %p46_p1  ;;  %s36_s26 = ssub.s32 %s2638_s19, %s3680_s23 }
   0xc   : > { %p151_p6 = scmp.eq.s32.totalorder %s2292_s21, 1  ;;  %p37_p7 = scmp.eq.s32.totalorder %s36_s26, 0 }
   0xd   : > { %p2746_p8 = por %p53_p5, %p52_p3  ;;  %p157_p10 = scmp.eq.s32.totalorder %s2293_s22, 1 }
   0xe   : > { %p2750_p9 = por %p151_p6, %p46_p1  ;;  %p2435_p13 = scmp.lt.s32.totalorder %s2642_s20, 2 }
   0xf   : > { %s2755_s29 = scalar_select %p37_p7, %s2630_s17, %s39_s24  }
  0x10   : > { %p2757_p11 = por %p157_p10, %p52_p3  ;;  %s195_s5 = sand.u32 1, %s2630_s17  }
  0x11   : > { %s2418_s6 = smul.u32 36, %s195_s5  ;;  %p2767_p0 = pnand %p2435_p13, %p2740_p4 }
  0x12   : > { %s3624_s30 = scalar_select %p2757_p11, 1, 0 }
  0x13   : > { %s2419_s7 = smul.u32 576, %s2638_s19  ;;  %p2299_p1 = scmp.ge.s32.totalorder %s2642_s20, 1 }
  0x14   : > { %s199_s12 = scalar_lea.vmem [#allocation3], %s2418_s6  ;;  %s196_s14 = scalar_lea.sflag [#allocation4], %s195_s5 }
  0x15   : > { %s205_s11 = scalar_lea.hbm %s3582_s0, %s2419_s7  ;;  %s207_s13 = sshll.u32 %s199_s12, 4  ;;  %s208_s13 = int_to_ptr.vmem [resolvable:$true] %s207_s13 }
  0x16   : > { %p2536_p2 = pneg %p2767_p0  ;;  %s2547_s21 = scalar_lea.vmem %s208_s13, 576 }
  0x17   : > { %p2548_p3 = scmp.ne.s32.totalorder %s208_s13, %s2547_s21  ;;  %s2644_s22 = smov [#allocation3]  }
  0x18   : > { %s2552_s24 = sshll.u32 %s2644_s22, 4  ;;  %s2553_s24 = int_to_ptr.vmem [resolvable:$false] %s2552_s24 }
  0x19   : > { %p2550_p5 = pnand %p2548_p3, %p2536_p2  ;;  %s2554_s25 = scalar_lea.vmem %s2553_s24, 1152 }
  0x1a   : > { %p2555_p4 = scmp.lt.s32.totalorder %s208_s13, %s2553_s24  ;;  %p2556_p7 = scmp.lt.s32.totalorder %s2554_s25, %s2547_s21 }
  0x1b   : > { %p2551_p6 = pneg %p2550_p5 }
  0x1c   : > { %p2557_p10 = por %p2556_p7, %p2555_p4 }
  0x1e   : > { %p2558_p13 = pnand %p2557_p10, %p2551_p6 }
  0x20   : > { %2561 = shalt.err (!%p2558_p13)
}
  0x21   : > { %2430 = dma.hbm_to_vmem [thread:$0]  (!%p2767_p0), %s205_s11, 576, %s208_s13, %s196_s14  }
  0x22   : > { %p212_p12 = scmp.lt.s32.totalorder %s2642_s20, 3 }
  0x24   : > { %p213_p11 = pnand %p2299_p1, %p212_p12 }
  0x25   : > { %s2783_s26 = sand.u32 (!%p213_p11), 1, %s2626_s16  }
  0x26   : > { %216 = sbr.rel (%p213_p11) target bundleno = 921 (0x399), region = 36  ;;  %s219_s6 = scalar_lea.sflag (!%p213_p11), [#allocation4], %s2783_s26 }
  0x27   : > { %s2420_s5 = smul.u32 (!%p213_p11), 36, %s2783_s26 }
  0x29   : > { %s2787_s7 = scalar_lea.vmem (!%p213_p11), [#allocation3], %s2420_s5 }
  0x2b   : > { %2613 = dma.done.wait (%p2746_p8), %s219_s6, 576  }
  0x2c   : > { %2615 = vsyncadd (%p2746_p8), %s219_s6, 4294966720  ;;  %v2794_v0 = vld [vmem:[%s2787_s7] sm:$0xff]  ;;  %s2645_s8 = smov 8   ;;  %s2646_s9 = smov 16   ;;  %v2801_v1 = vld [vmem:[%s2787_s7 + $0x8] sm:$0xff]  ;;  %vm294_vm0 = vcmask 1043456  }
  0x2d   : > { %787 = vrot.lane.b32.xlu1 %v2794_v0, %s2645_s8  ;;  %751 = vrot.lane.b32.xlu0 %v2794_v0, %s2646_s9  ;;  %s2647_s27 = smov 18   ;;  %s2648_s10 = smov 17   ;;  %v2816_v2 = vld [vmem:[%s2787_s7 + $0x10] sm:$0xff]  ;;  %v2875_v3 = vld [vmem:[%s2787_s7] sm:$0xff]  ;;  %vm800_vm1 = vcmask 64512   ;;  %vm764_vm2 = vcmask 130048  }
  0x2e   : > { %s2649_s11 = smov 27   ;;  %s2650_s12 = smov 26   ;;  %v2886_v4 = vld [vmem:[%s2787_s7 + $0x8] sm:$0xff]  ;;  %v2915_v7 = vld [vmem:[%s2787_s7 + $0x14] sm:$0xff]  ;;  %vm692_vm3 = vcmask 146432   ;;  %vm728_vm4 = vcmask 138240  }
  0x2f   : > { %s2651_s13 = smov 106   ;;  %s2652_s14 = smov 28   ;;  %v2897_v5 = vld [vmem:[%s2787_s7 + $0x4] sm:$0xff]  ;;  %v2904_v6 = vld [vmem:[%s2787_s7 + $0xc] sm:$0xff]  ;;  %vm620_vm5 = vcmask 220160   ;;  %vm656_vm6 = vcmask 211968  }
  0x30   : > { %s3587_s21 = smov 108   ;;  %s3600_s22 = smov 107   ;;  %v3010_v60 = vld [vmem:[%s3583_s1] sm:$0xff]  ;;  %vm1812_vm7 = vcmask 719872   ;;  %vm548_vm8 = vcmask 867328   ;;  %vm584_vm9 = vcmask 228352  }
  0x31   : > { %789 = vrot.lane.b32.xlu1 %v2801_v1, %s2645_s8  ;;  %753 = vrot.lane.b32.xlu0 %v2801_v1, %s2646_s9  ;;  %s3589_s24 = smov 117   ;;  %s3588_s25 = smov 116   ;;  %vm3601_vm10 = vcmask 883712   ;;  %vm512_vm11 = vcmask 875520   ;;  %vm3605_vm12 = vcmask 957440   ;;  %vm3607_vm13 = vcmask 949248  }
  0x32   : > { %s3592_s5 = smov 126   ;;  %s3590_s6 = smov 118   ;;  %vm3602_vm14 = vcmask 1031168   ;;  %vm3603_vm15 = vcmask 965632  }
  0x35   : > { %681 = vrot.lane.b32.xlu1 %v2801_v1, %s2647_s27  ;;  %679 = vrot.lane.b32.xlu0 %v2794_v0, %s2647_s27 }
  0x39   : > { %717 = vrot.lane.b32.xlu1 %v2801_v1, %s2648_s10  ;;  %715 = vrot.lane.b32.xlu0 %v2794_v0, %s2648_s10 }
  0x3d   : > { %791 = vrot.lane.b32.xlu1 %v2816_v2, %s2645_s8  ;;  %755 = vrot.lane.b32.xlu0 %v2816_v2, %s2646_s9 }
  0x41   : > { %609 = vrot.lane.b32.xlu1 %v2801_v1, %s2649_s11  ;;  %607 = vrot.lane.b32.xlu0 %v2794_v0, %s2649_s11 }
  0x45   : > { %645 = vrot.lane.b32.xlu1 %v2801_v1, %s2650_s12  ;;  %643 = vrot.lane.b32.xlu0 %v2794_v0, %s2650_s12 }
  0x49   : > { %719 = vrot.lane.b32.xlu1 %v2816_v2, %s2648_s10  ;;  %683 = vrot.lane.b32.xlu0 %v2816_v2, %s2647_s27 }
  0x4d   : > { %537 = vrot.lane.b32.xlu1 %v2801_v1, %s2651_s13  ;;  %535 = vrot.lane.b32.xlu0 %v2794_v0, %s2651_s13 }
  0x51   : > { %573 = vrot.lane.b32.xlu1 %v2801_v1, %s2652_s14  ;;  %571 = vrot.lane.b32.xlu0 %v2794_v0, %s2652_s14 }
  0x55   : > { %647 = vrot.lane.b32.xlu1 %v2816_v2, %s2650_s12  ;;  %611 = vrot.lane.b32.xlu0 %v2816_v2, %s2649_s11 }
  0x59   : > { %465 = vrot.lane.b32.xlu1 %v2801_v1, %s3587_s21  ;;  %463 = vrot.lane.b32.xlu0 %v2794_v0, %s3587_s21 }
  0x5d   : > { %501 = vrot.lane.b32.xlu1 %v2801_v1, %s3600_s22  ;;  %499 = vrot.lane.b32.xlu0 %v2794_v0, %s3600_s22 }
  0x61   : > { %575 = vrot.lane.b32.xlu1 %v2816_v2, %s2652_s14  ;;  %539 = vrot.lane.b32.xlu0 %v2816_v2, %s2651_s13 }
  0x65   : > { %393 = vrot.lane.b32.xlu1 %v2801_v1, %s3589_s24  ;;  %391 = vrot.lane.b32.xlu0 %v2794_v0, %s3589_s24 }
  0x69   : > { %429 = vrot.lane.b32.xlu1 %v2801_v1, %s3588_s25  ;;  %427 = vrot.lane.b32.xlu0 %v2794_v0, %s3588_s25 }
  0x6d   : > { %503 = vrot.lane.b32.xlu1 %v2816_v2, %s3600_s22  ;;  %467 = vrot.lane.b32.xlu0 %v2816_v2, %s3587_s21  ;;  %s3591_s21 = smov 127   ;;  %s2670_s22 = smov 6  }
  0x71   : > { %321 = vrot.lane.b32.xlu1 %v2801_v1, %s3592_s5  ;;  %319 = vrot.lane.b32.xlu0 %v2794_v0, %s3592_s5 }
  0x75   : > { %357 = vrot.lane.b32.xlu1 %v2801_v1, %s3590_s6  ;;  %355 = vrot.lane.b32.xlu0 %v2794_v0, %s3590_s6 }
  0x79   : > { %431 = vrot.lane.b32.xlu1 %v2816_v2, %s3588_s25  ;;  %395 = vrot.lane.b32.xlu0 %v2816_v2, %s3589_s24  ;;  %s3593_s25 = smov 34   ;;  %s3595_s24 = smov 36  }
  0x7d   : > { %284 = vrot.lane.b32.xlu1 %v2801_v1, %s3591_s21  ;;  %282 = vrot.lane.b32.xlu0 %v2794_v0, %s3591_s21 }
  0x81   : > { %359 = vrot.lane.b32.xlu1 %v2816_v2, %s3590_s6  ;;  %323 = vrot.lane.b32.xlu0 %v2816_v2, %s3592_s5  ;;  %s3594_s6 = smov 35   ;;  %s3597_s5 = smov 44  }
  0x85   : > { %1183 = vrot.lane.b32.xlu1 %v2897_v5, %s3593_s25  ;;  %286 = vrot.lane.b32.xlu0 %v2816_v2, %s3591_s21  ;;  %s3596_s21 = smov 45  }
  0x89   : > { %1111 = vrot.lane.b32.xlu1 %v2897_v5, %s3595_s24  ;;  %1185 = vrot.lane.b32.xlu0 %v2904_v6, %s3593_s25 }
  0x8d   : > { %1147 = vrot.lane.b32.xlu1 %v2897_v5, %s3594_s6  ;;  %1113 = vrot.lane.b32.xlu0 %v2904_v6, %s3595_s24 }
  0x91   : > { %1187 = vrot.lane.b32.xlu1 %v2915_v7, %s3593_s25  ;;  %1149 = vrot.lane.b32.xlu0 %v2904_v6, %s3594_s6  ;;  %s3598_s25 = smov 54  }
  0x95   : > { %1041 = vrot.lane.b32.xlu1 %v2904_v6, %s3596_s21  ;;  %1039 = vrot.lane.b32.xlu0 %v2897_v5, %s3596_s21 }
  0x99   : > { %1077 = vrot.lane.b32.xlu1 %v2904_v6, %s3597_s5  ;;  %1075 = vrot.lane.b32.xlu0 %v2897_v5, %s3597_s5 }
  0x9d   : > { %1151 = vrot.lane.b32.xlu1 %v2915_v7, %s3594_s6  ;;  %1115 = vrot.lane.b32.xlu0 %v2915_v7, %s3595_s24  ;;  %s3599_s6 = smov 46   ;;  %s2667_s24 = smov 56  }
  0x9f   : > { %v788_v8 = vpop.permute.xlu1 %787  ;;  %v752_v9 = vpop.permute.xlu0 %751 }
  0xa0   : > { %v795_v12 = vrot.slane %v788_v8, 4  ;;  %v759_v13 = vrot.slane %v752_v9, 4 }
  0xa1   : > { %969 = vrot.lane.b32.xlu1 %v2904_v6, %s3598_s25  ;;  %967 = vrot.lane.b32.xlu0 %v2897_v5, %s3598_s25 }
  0xa3   : > { %v790_v10 = vpop.permute.xlu1 %789  ;;  %v754_v11 = vpop.permute.xlu0 %753 }
  0xa4   : > { %v796_v14 = vrot.slane %v790_v10, 4  ;;  %v760_v15 = vrot.slane %v754_v11, 4 }
  0xa5   : > { %1005 = vrot.lane.b32.xlu1 %v2904_v6, %s3599_s6  ;;  %1003 = vrot.lane.b32.xlu0 %v2897_v5, %s3599_s6 }
  0xa6   : > { %v799_v16 = vsel %vm294_vm0, %v795_v12, %v796_v14  ;;  %v763_v17 = vsel %vm294_vm0, %v759_v13, %v760_v15 }
  0xa7   : > { %v801_v18 = vsel %vm800_vm1, %v788_v8, %v799_v16  ;;  %v765_v19 = vsel %vm764_vm2, %v752_v9, %v763_v17  ;;  %v2945_v20 = vpop.permute.xlu1 %681  ;;  %v680_v21 = vpop.permute.xlu0 %679  ;;  %v3049_v17 = vld [vmem:[%s2787_s7 + $0x18] sm:$0xff] }
  0xa8   : > { %v688_v22 = vrot.slane %v2945_v20, 4  ;;  %v687_v23 = vrot.slane %v680_v21, 4  ;;  %v2352_v24 = vcombine.high %v765_v19, %v801_v18  ;;  %v2351_v25 = vcombine.low %v765_v19, %v801_v18 }
  0xa9   : > { %1079 = vrot.lane.b32.xlu1 %v2915_v7, %s3597_s5  ;;  %1043 = vrot.lane.b32.xlu0 %v2915_v7, %s3596_s21  ;;  %s2668_s21 = smov 55   ;;  %s2669_s5 = smov 7  }
  0xaa   : > { %v691_v26 = vsel %vm294_vm0, %v687_v23, %v688_v22  ;;  %1838 = vmatprep.subr.bf16.mxu0 %v2352_v24 }
  0xab   : > { %v693_v27 = vsel %vm692_vm3, %v680_v21, %v691_v26  ;;  %v2956_v28 = vpop.permute.xlu1 %717  ;;  %v716_v29 = vpop.permute.xlu0 %715  ;;  %1839 = vmatpush1.bf16.msra.mxu0 %v2351_v25  ;;  %v2671_v26 = vmov 0  }
  0xac   : > { %v724_v30 = vrot.slane %v2956_v28, 4  ;;  %v723_v31 = vrot.slane %v716_v29, 4  ;;  %2513 = vset.pattern.permute.xlu0 %v2671_v26 }
  0xad   : > { %897 = vrot.lane.b32.xlu1 %v2904_v6, %s2667_s24  ;;  %895 = vrot.lane.b32.xlu0 %v2897_v5, %s2667_s24 }
  0xae   : > { %v727_v32 = vsel %vm294_vm0, %v723_v31, %v724_v30 }
  0xaf   : > { %v729_v33 = vsel %vm728_vm4, %v716_v29, %v727_v32  ;;  %v2965_v34 = vpop.permute.xlu1 %791  ;;  %v2967_v35 = vpop.permute.xlu0 %755 }
  0xb0   : > { %v797_v36 = vrot.slane %v2965_v34, 4  ;;  %v761_v37 = vrot.slane %v2967_v35, 4  ;;  %v2345_v38 = vcombine.high %v693_v27, %v729_v33  ;;  %v2344_v39 = vcombine.low %v693_v27, %v729_v33 }
  0xb1   : > { %933 = vrot.lane.b32.xlu1 %v2904_v6, %s2668_s21  ;;  %931 = vrot.lane.b32.xlu0 %v2897_v5, %s2668_s21  ;;  %v3020_v6 = vcombine.high %v3010_v60, %v3010_v60 }
  0xb2   : > { %v802_v40 = vsel %vm294_vm0, %v796_v14, %v797_v36  ;;  %v766_v41 = vsel %vm294_vm0, %v760_v15, %v761_v37  ;;  %1840 = vmatprep.subr.bf16.mxu0 %v2345_v38 }
  0xb3   : > { %v803_v42 = vsel %vm800_vm1, %v790_v10, %v802_v40  ;;  %v767_v43 = vsel %vm764_vm2, %v754_v11, %v766_v41  ;;  %v2983_v44 = vpop.permute.xlu1 %609  ;;  %v608_v45 = vpop.permute.xlu0 %607  ;;  %1841 = vmatpush1.bf16.msra.mxu0 %v2344_v39  ;;  %2401 = vmatprep.mubr.msk.bf16.mxu0 %vm1812_vm7, %v3020_v6 }
  0xb4   : > { %v616_v46 = vrot.slane %v2983_v44, 4  ;;  %v615_v47 = vrot.slane %v608_v45, 4  ;;  %v2354_v48 = vcombine.high %v767_v43, %v803_v42  ;;  %v2353_v49 = vcombine.low %v767_v43, %v803_v42  ;;  %2403 = vmatprep.mubr.msk.bf16.mxu1 %vm1812_vm7, %v3020_v6 }
  0xb5   : > { %1007 = vrot.lane.b32.xlu1 %v2915_v7, %s3599_s6  ;;  %971 = vrot.lane.b32.xlu0 %v2915_v7, %s3598_s25  ;;  %s3635_s25 = smov 36   ;;  %s3636_s6 = smov 44  }
  0xb6   : > { %v619_v50 = vsel %vm294_vm0, %v615_v47, %v616_v46  ;;  %1879 = vmatprep.subr.bf16.mxu1 %v2354_v48 }
  0xb7   : > { %v621_v51 = vsel %vm620_vm5, %v608_v45, %v619_v50  ;;  %v2994_v52 = vpop.permute.xlu1 %645  ;;  %v644_v53 = vpop.permute.xlu0 %643  ;;  %1880 = vmatpush1.bf16.msra.mxu1 %v2353_v49 }
  0xb8   : > { %v652_v54 = vrot.slane %v2994_v52, 4  ;;  %v651_v55 = vrot.slane %v644_v53, 4 }
  0xb9   : > { %825 = vrot.lane.b32.xlu1 %v2801_v1, %s2669_s5  ;;  %823 = vrot.lane.b32.xlu0 %v2794_v0, %s2669_s5 }
  0xba   : > { %v655_v56 = vsel %vm294_vm0, %v651_v55, %v652_v54 }
  0xbb   : > { %v657_v57 = vsel %vm656_vm6, %v644_v53, %v655_v56  ;;  %v3003_v58 = vpop.permute.xlu1 %719  ;;  %v3005_v59 = vpop.permute.xlu0 %683 }
  0xbc   : > { %v725_v61 = vrot.slane %v3003_v58, 4  ;;  %v689_v62 = vrot.slane %v3005_v59, 4  ;;  %v2338_v63 = vcombine.high %v621_v51, %v657_v57  ;;  %v2337_v5 = vcombine.low %v621_v51, %v657_v57 }
  0xbd   : > { %861 = vrot.lane.b32.xlu1 %v2801_v1, %s2670_s22  ;;  %859 = vrot.lane.b32.xlu0 %v2794_v0, %s2670_s22 }
  0xbe   : > { %v730_v8 = vsel %vm294_vm0, %v724_v30, %v725_v61  ;;  %v694_v9 = vsel %vm294_vm0, %v688_v22, %v689_v62  ;;  %1842 = vmatprep.subr.bf16.mxu0 %v2338_v63 }
  0xbf   : > { %v731_v0 = vsel %vm728_vm4, %v2956_v28, %v730_v8  ;;  %v695_v1 = vsel %vm692_vm3, %v2945_v20, %v694_v9  ;;  %v3034_v10 = vpop.permute.xlu1 %537  ;;  %v536_v11 = vpop.permute.xlu0 %535  ;;  %1843 = vmatpush1.bf16.msra.mxu0 %v2337_v5 }
  0xc0   : > { %v544_v12 = vrot.slane %v3034_v10, 4  ;;  %v543_v13 = vrot.slane %v536_v11, 4  ;;  %v2347_v14 = vcombine.high %v695_v1, %v731_v0  ;;  %v2346_v15 = vcombine.low %v695_v1, %v731_v0 }
  0xc1   : > { %935 = vrot.lane.b32.xlu1 %v2915_v7, %s2668_s21  ;;  %899 = vrot.lane.b32.xlu0 %v2915_v7, %s2667_s24 }
  0xc2   : > { %v547_v16 = vsel %vm294_vm0, %v543_v13, %v544_v12  ;;  %1881 = vmatprep.subr.bf16.mxu1 %v2347_v14 }
  0xc3   : > { %v549_v18 = vsel %vm548_vm8, %v536_v11, %v547_v16  ;;  %v574_v19 = vpop.permute.xlu1 %573  ;;  %v572_v20 = vpop.permute.xlu0 %571  ;;  %1882 = vmatpush1.bf16.msra.mxu1 %v2346_v15 }
  0xc4   : > { %v580_v21 = vrot.slane %v574_v19, 4  ;;  %v579_v22 = vrot.slane %v572_v20, 4 }
  0xc5   : > { %793 = vrot.lane.b32.xlu1 %v3049_v17, %s2645_s8  ;;  %757 = vrot.lane.b32.xlu0 %v3049_v17, %s2646_s9  ;;  %s3626_s8 = smov 107   ;;  %s3627_s9 = smov 108  }
  0xc6   : > { %v583_v7 = vsel %vm294_vm0, %v579_v22, %v580_v21  ;;  %v3132_v22 = vld [vmem:[%s2787_s7 + $0x10] sm:$0xff] }
  0xc7   : > { %v585_v23 = vsel %vm584_vm9, %v572_v20, %v583_v7  ;;  %v3058_v24 = vpop.permute.xlu1 %647  ;;  %v3060_v25 = vpop.permute.xlu0 %611 }
  0xc8   : > { %v653_v27 = vrot.slane %v3058_v24, 4  ;;  %v617_v28 = vrot.slane %v3060_v25, 4  ;;  %v2331_v29 = vcombine.high %v549_v18, %v585_v23  ;;  %v2330_v30 = vcombine.low %v549_v18, %v585_v23 }
  0xc9   : > { %863 = vrot.lane.b32.xlu1 %v2816_v2, %s2670_s22  ;;  %827 = vrot.lane.b32.xlu0 %v2816_v2, %s2669_s5 }
  0xca   : > { %v658_v31 = vsel %vm294_vm0, %v652_v54, %v653_v27  ;;  %v622_v32 = vsel %vm294_vm0, %v616_v46, %v617_v28  ;;  %1844 = vmatprep.subr.bf16.mxu0 %v2331_v29 }
  0xcb   : > { %v659_v33 = vsel %vm656_vm6, %v2994_v52, %v658_v31  ;;  %v623_v38 = vsel %vm620_vm5, %v2983_v44, %v622_v32  ;;  %v3081_v39 = vpop.permute.xlu1 %465  ;;  %v464_v2 = vpop.permute.xlu0 %463  ;;  %1845 = vmatpush1.bf16.msra.mxu0 %v2330_v30 }
  0xcc   : > { %v472_v40 = vrot.slane %v3081_v39, 4  ;;  %v471_v41 = vrot.slane %v464_v2, 4  ;;  %v2340_v42 = vcombine.high %v623_v38, %v659_v33  ;;  %v2339_v43 = vcombine.low %v623_v38, %v659_v33 }
  0xcd   : > { %721 = vrot.lane.b32.xlu1 %v3049_v17, %s2648_s10  ;;  %685 = vrot.lane.b32.xlu0 %v3049_v17, %s2647_s27  ;;  %s3628_s27 = smov 116   ;;  %s3629_s10 = smov 117  }
  0xce   : > { %v475_v44 = vsel %vm294_vm0, %v471_v41, %v472_v40  ;;  %1883 = vmatprep.subr.bf16.mxu1 %v2340_v42  ;;  %v1178_v42 = vld [vmem:[%s2787_s7 + $0x1c] sm:$0xff] }
  0xcf   : > { %v477_v45 = vsel %vm3601_vm10, %v464_v2, %v475_v44  ;;  %v502_v46 = vpop.permute.xlu1 %501  ;;  %v500_v47 = vpop.permute.xlu0 %499  ;;  %1884 = vmatpush1.bf16.msra.mxu1 %v2339_v43 }
  0xd0   : > { %v508_v48 = vrot.slane %v502_v46, 4  ;;  %v507_v49 = vrot.slane %v500_v47, 4 }
  0xd1   : > { %649 = vrot.lane.b32.xlu1 %v3049_v17, %s2650_s12  ;;  %613 = vrot.lane.b32.xlu0 %v3049_v17, %s2649_s11  ;;  %s3630_s11 = smov 118   ;;  %s3631_s12 = smov 126  }
  0xd2   : > { %v511_v50 = vsel %vm294_vm0, %v507_v49, %v508_v48 }
  0xd3   : > { %v513_v51 = vsel %vm512_vm11, %v500_v47, %v511_v50  ;;  %v3098_v52 = vpop.permute.xlu1 %575  ;;  %v3100_v53 = vpop.permute.xlu0 %539 }
  0xd4   : > { %v581_v54 = vrot.slane %v3098_v52, 4  ;;  %v545_v55 = vrot.slane %v3100_v53, 4  ;;  %v2324_v56 = vcombine.high %v477_v45, %v513_v51  ;;  %v2323_v57 = vcombine.low %v477_v45, %v513_v51 }
  0xd5   : > { %577 = vrot.lane.b32.xlu1 %v3049_v17, %s2652_s14  ;;  %541 = vrot.lane.b32.xlu0 %v3049_v17, %s2651_s13  ;;  %s3632_s13 = smov 34   ;;  %s3633_s14 = smov 127  }
  0xd6   : > { %v586_v63 = vsel %vm294_vm0, %v580_v21, %v581_v54  ;;  %v550_v5 = vsel %vm294_vm0, %v544_v12, %v545_v55  ;;  %1846 = vmatprep.subr.bf16.mxu0 %v2324_v56 }
  0xd7   : > { %v587_v8 = vsel %vm584_vm9, %v574_v19, %v586_v63  ;;  %v551_v9 = vsel %vm548_vm8, %v3034_v10, %v550_v5  ;;  %v3119_v0 = vpop.permute.xlu1 %393  ;;  %v392_v1 = vpop.permute.xlu0 %391  ;;  %1847 = vmatpush1.bf16.msra.mxu0 %v2323_v57  ;;  %v269_v19 = vld [vmem:[%s2787_s7 + $0x18] sm:$0xf]  ;;  %s3634_s7 = smov 35  }
  0xd8   : > { %v400_v11 = vrot.slane %v3119_v0, 4  ;;  %v399_v13 = vrot.slane %v392_v1, 4  ;;  %v2333_v14 = vcombine.high %v551_v9, %v587_v8  ;;  %v2332_v15 = vcombine.low %v551_v9, %v587_v8  ;;  %273 = vst [vmem:[#allocation2 + $0x18] sm:$0xf] %v269_v19 }
  0xd9   : > { %505 = vrot.lane.b32.xlu1 %v3049_v17, %s3626_s8  ;;  %469 = vrot.lane.b32.xlu0 %v3049_v17, %s3627_s9  ;;  %s3637_s8 = smov 45   ;;  %s3638_s9 = smov 46  }
  0xda   : > { %v403_v10 = vsel %vm294_vm0, %v399_v13, %v400_v11  ;;  %1885 = vmatprep.subr.bf16.mxu1 %v2333_v14 }
  0xdb   : > { %v405_v12 = vsel %vm3605_vm12, %v392_v1, %v403_v10  ;;  %v430_v16 = vpop.permute.xlu1 %429  ;;  %v428_v18 = vpop.permute.xlu0 %427  ;;  %1886 = vmatpush1.bf16.msra.mxu1 %v2332_v15 }
  0xdc   : > { %v436_v20 = vrot.slane %v430_v16, 4  ;;  %v435_v21 = vrot.slane %v428_v18, 4 }
  0xdd   : > { %433 = vrot.lane.b32.xlu1 %v3049_v17, %s3628_s27  ;;  %397 = vrot.lane.b32.xlu0 %v3049_v17, %s3629_s10  ;;  %s3639_s27 = smov 54   ;;  %s2421_s10 = smul.u32 28, %s2783_s26 }
  0xde   : > { %v439_v7 = vsel %vm294_vm0, %v435_v21, %v436_v20 }
  0xdf   : > { %v441_v23 = vsel %vm3607_vm13, %v428_v18, %v439_v7  ;;  %v3140_v29 = vpop.permute.xlu1 %503  ;;  %v3142_v30 = vpop.permute.xlu0 %467 }
  0xe0   : > { %v509_v31 = vrot.slane %v3140_v29, 4  ;;  %v473_v32 = vrot.slane %v3142_v30, 4  ;;  %v2317_v33 = vcombine.high %v405_v12, %v441_v23  ;;  %v2316_v38 = vcombine.low %v405_v12, %v441_v23 }
  0xe1   : > { %361 = vrot.lane.b32.xlu1 %v3049_v17, %s3630_s11  ;;  %325 = vrot.lane.b32.xlu0 %v3049_v17, %s3631_s12  ;;  %s2422_s11 = smul.u32 448, %s2634_s18  ;;  %s255_s12 = scalar_lea.vmem [#allocation6], %s2421_s10 }
  0xe2   : > { %v514_v2 = vsel %vm294_vm0, %v508_v48, %v509_v31  ;;  %v478_v41 = vsel %vm294_vm0, %v472_v40, %v473_v32  ;;  %1848 = vmatprep.subr.bf16.mxu0 %v2317_v33  ;;  %s2165_s18 = scalar_lea.sflag [#allocation5], %s2783_s26 }
  0xe3   : > { %v515_v43 = vsel %vm512_vm11, %v502_v46, %v514_v2  ;;  %v479_v44 = vsel %vm3601_vm10, %v3081_v39, %v478_v41  ;;  %v3162_v45 = vpop.permute.xlu1 %321  ;;  %v320_v47 = vpop.permute.xlu0 %319  ;;  %1849 = vmatpush1.bf16.msra.mxu0 %v2316_v38  ;;  %vm3604_vm10 = vcmask 1039360  }
  0xe4   : > { %v328_v48 = vrot.slane %v3162_v45, 4  ;;  %v327_v49 = vrot.slane %v320_v47, 4  ;;  %v2326_v50 = vcombine.high %v479_v44, %v515_v43  ;;  %v2325_v51 = vcombine.low %v479_v44, %v515_v43 }
  0xe5   : > { %1189 = vrot.lane.b32.xlu1 %v1178_v42, %s3632_s13  ;;  %288 = vrot.lane.b32.xlu0 %v3049_v17, %s3633_s14  ;;  %s2181_s13 = sshll.u32 %s255_s12, 4  ;;  %s3536_s13 = int_to_ptr.vmem [resolvable:$true] %s2181_s13 }
  0xe6   : > { %v331_v40 = vsel %vm294_vm0, %v327_v49, %v328_v48  ;;  %1887 = vmatprep.subr.bf16.mxu1 %v2326_v50 }
  0xe7   : > { %v333_v39 = vsel %vm3602_vm14, %v320_v47, %v331_v40  ;;  %v358_v46 = vpop.permute.xlu1 %357  ;;  %v356_v56 = vpop.permute.xlu0 %355  ;;  %1888 = vmatpush1.bf16.msra.mxu1 %v2325_v51 }
  0xe8   : > { %v364_v57 = vrot.slane %v358_v46, 4  ;;  %v363_v63 = vrot.slane %v356_v56, 4 }
  0xe9   : > { %1153 = vrot.lane.b32.xlu1 %v1178_v42, %s3634_s7  ;;  %1117 = vrot.lane.b32.xlu0 %v1178_v42, %s3635_s25  ;;  %s3534_s25 = scalar_lea.hbm %s3586_s4, %s2422_s11 }
  0xea   : > { %v367_v5 = vsel %vm294_vm0, %v363_v63, %v364_v57 }
  0xeb   : > { %v369_v8 = vsel %vm3603_vm15, %v356_v56, %v367_v5  ;;  %v3174_v9 = vpop.permute.xlu1 %431  ;;  %v3176_v1 = vpop.permute.xlu0 %395 }
  0xec   : > { %v437_v13 = vrot.slane %v3174_v9, 4  ;;  %v401_v14 = vrot.slane %v3176_v1, 4  ;;  %v2310_v15 = vcombine.high %v333_v39, %v369_v8  ;;  %v2309_v10 = vcombine.low %v333_v39, %v369_v8 }
  0xed   : > { %1081 = vrot.lane.b32.xlu1 %v1178_v42, %s3636_s6  ;;  %1045 = vrot.lane.b32.xlu0 %v1178_v42, %s3637_s8  ;;  %s2562_s6 = scalar_lea.vmem %s3536_s13, 448  ;;  %s2673_s8 = smov [#allocation6]  }
  0xee   : > { %v442_v12 = vsel %vm294_vm0, %v436_v20, %v437_v13  ;;  %v406_v18 = vsel %vm294_vm0, %v400_v11, %v401_v14  ;;  %1850 = vmatprep.subr.bf16.mxu0 %v2310_v15  ;;  %p2563_p8 = scmp.ne.s32.totalorder %s3536_s13, %s2562_s6 }
  0xef   : > { %v443_v19 = vsel %vm3607_vm13, %v430_v16, %v442_v12  ;;  %v407_v21 = vsel %vm3605_vm12, %v3119_v0, %v406_v18  ;;  %v285_v7 = vpop.permute.xlu1 %284  ;;  %v283_v23 = vpop.permute.xlu0 %282  ;;  %1851 = vmatpush1.bf16.msra.mxu0 %v2309_v10  ;;  %vm3613_vm12 = vcmask 367616   ;;  %vm980_vm13 = vcmask 441344  }
  0xf0   : > { %v291_v33 = vrot.slane %v285_v7, 4  ;;  %v290_v38 = vrot.slane %v283_v23, 4  ;;  %v2319_v2 = vcombine.high %v407_v21, %v443_v19  ;;  %v2318_v20 = vcombine.low %v407_v21, %v443_v19  ;;  %p2564_p11 = pnand %p2563_p8, %p2750_p9 }
  0xf1   : > { %1009 = vrot.lane.b32.xlu1 %v1178_v42, %s3638_s9  ;;  %973 = vrot.lane.b32.xlu0 %v1178_v42, %s3639_s27  ;;  %s2566_s9 = sshll.u32 %s2673_s8, 4  ;;  %s2567_s9 = int_to_ptr.vmem [resolvable:$false] %s2566_s9 }
  0xf2   : > { %v295_v11 = vsel %vm294_vm0, %v290_v38, %v291_v33  ;;  %1889 = vmatprep.subr.bf16.mxu1 %v2319_v2  ;;  %p2565_p12 = pneg %p2564_p11  ;;  %s2568_s27 = scalar_lea.vmem %s2567_s9, 896 }
  0xf3   : > { %v297_v16 = vsel %vm3604_vm10, %v283_v23, %v295_v11  ;;  %v3197_v41 = vpop.permute.xlu1 %359  ;;  %v3199_v0 = vpop.permute.xlu0 %323  ;;  %1890 = vmatpush1.bf16.msra.mxu1 %v2318_v20  ;;  %p2569_p0 = scmp.lt.s32.totalorder %s3536_s13, %s2567_s9  ;;  %p2570_p1 = scmp.lt.s32.totalorder %s2568_s27, %s2562_s6 }
  0xf4   : > { %v365_v43 = vrot.slane %v3197_v41, 4  ;;  %v329_v44 = vrot.slane %v3199_v0, 4  ;;  %v2303_v47 = vcombine.high %v2875_v3, %v297_v16  ;;  %v2302_v49 = vcombine.low %v2875_v3, %v297_v16 }
  0xf5   : > { %937 = vrot.lane.b32.xlu1 %v1178_v42, %s2668_s21  ;;  %901 = vrot.lane.b32.xlu0 %v1178_v42, %s2667_s24  ;;  %p2571_p2 = por %p2570_p1, %p2569_p0 }
  0xf6   : > { %v370_v50 = vsel %vm294_vm0, %v364_v57, %v365_v43  ;;  %v334_v51 = vsel %vm294_vm0, %v328_v48, %v329_v44  ;;  %1852 = vmatprep.subr.bf16.mxu0 %v2303_v47 }
  0xf7   : > { %v371_v40 = vsel %vm3603_vm15, %v358_v46, %v370_v50  ;;  %v335_v39 = vsel %vm3602_vm14, %v3162_v45, %v334_v51  ;;  %v1184_v56 = vpop.permute.xlu1 %1183  ;;  %v3216_v3 = vpop.permute.xlu0 %286  ;;  %1853 = vmatpush1.bf16.msra.mxu0 %v2302_v49  ;;  %vm3606_vm14 = vcmask 277504   ;;  %vm3609_vm15 = vcmask 293888   ;;  %p2572_p3 = pnand %p2571_p2, %p2565_p12 }
  0xf8   : > { %v3616_v42 = vrot.slane %v3216_v3, 4  ;;  %v2312_v63 = vcombine.high %v335_v39, %v371_v40  ;;  %v2311_v5 = vcombine.low %v335_v39, %v371_v40  ;;  %v1191_v8 = vrot.slane %v1184_v56, 4 }
  0xf9   : > { %865 = vrot.lane.b32.xlu1 %v3049_v17, %s2670_s22  ;;  %829 = vrot.lane.b32.xlu0 %v3049_v17, %s2669_s5 }
  0xfa   : > { %v298_v48 = vsel %vm294_vm0, %v291_v33, %v3616_v42  ;;  %1891 = vmatprep.subr.bf16.mxu1 %v2312_v63 }
  0xfb   : > { %v299_v45 = vsel %vm3604_vm10, %v285_v7, %v298_v48  ;;  %v1112_v46 = vpop.permute.xlu1 %1111  ;;  %v1186_v57 = vpop.permute.xlu0 %1185  ;;  %1892 = vmatpush1.bf16.msra.mxu1 %v2311_v5  ;;  %vm3608_vm10 = vcmask 285696  }
  0xfc   : > { %v1192_v15 = vrot.slane %v1186_v57, 4  ;;  %v2305_v10 = vcombine.high %v2886_v4, %v299_v45  ;;  %v2304_v12 = vcombine.low %v2886_v4, %v299_v45  ;;  %v1119_v7 = vrot.slane %v1112_v46, 4 }
  0xfe   : > { %v1195_v18 = vsel %vm294_vm0, %v1191_v8, %v1192_v15  ;;  %1893 = vmatprep.subr.bf16.mxu1 %v2305_v10 }
  0xff   : > { %v1197_v17 = vsel %vm3606_vm14, %v1184_v56, %v1195_v18  ;;  %v1148_v19 = vpop.permute.xlu1 %1147  ;;  %v1114_v21 = vpop.permute.xlu0 %1113  ;;  %1894 = vmatpush1.bf16.msra.mxu1 %v2304_v12 }
 0x100   : > { %v1120_v23 = vrot.slane %v1114_v21, 4  ;;  %v2394_v33 = vcombine.high %v1197_v17, %v1197_v17  ;;  %v2393_v38 = vcombine.low %v1197_v17, %v1197_v17  ;;  %v1155_v47 = vrot.slane %v1148_v19, 4 }
 0x102   : > { %v1123_v2 = vsel %vm294_vm0, %v1119_v7, %v1120_v23  ;;  %2400 = vmatprep.subr.msk.bf16.mxu0 %vm294_vm0, %v2394_v33  ;;  %v1818_v20 = vsel %vm294_vm0, %v2393_v38, 0 }
 0x103   : > { %v1125_v4 = vsel %vm3609_vm15, %v1112_v46, %v1123_v2  ;;  %v3235_v11 = vpop.permute.xlu1 %1187  ;;  %v1150_v16 = vpop.permute.xlu0 %1149  ;;  %1859 = vmatpush2.bf16.msra.mxu0 %v1818_v20 }
 0x104   : > { %v3620_v49 = vrot.slane %v3235_v11, 4  ;;  %v1156_v50 = vrot.slane %v1150_v16, 4 }
 0x106   : > { %v1198_v51 = vsel %vm294_vm0, %v1192_v15, %v3620_v49  ;;  %v1159_v40 = vsel %vm294_vm0, %v1155_v47, %v1156_v50 }
 0x107   : > { %v1199_v39 = vsel %vm3606_vm14, %v1186_v57, %v1198_v51  ;;  %v1161_v56 = vsel %vm3608_vm10, %v1148_v19, %v1159_v40  ;;  %v3244_v63 = vpop.permute.xlu1 %1041  ;;  %v1040_v5 = vpop.permute.xlu0 %1039  ;;  %vm3611_vm14 = vcmask 359424  }
 0x108   : > { %v1048_v48 = vrot.slane %v3244_v63, 4  ;;  %v1047_v45 = vrot.slane %v1040_v5, 4  ;;  %v2387_v46 = vcombine.high %v1125_v4, %v1161_v56  ;;  %v2396_v8 = vcombine.high %v1199_v39, %v1199_v39 }
 0x109   : > { %v2386_v10 = vcombine.low %v1125_v4, %v1161_v56  ;;  %v2395_v12 = vcombine.low %v1199_v39, %v1199_v39 }
 0x10a   : > { %v1051_v18 = vsel %vm294_vm0, %v1047_v45, %v1048_v48  ;;  %1860 = vmatprep.subr.bf16.mxu0 %v2387_v46  ;;  %2402 = vmatprep.subr.msk.bf16.mxu1 %vm294_vm0, %v2396_v8 }
 0x10b   : > { %v1053_v57 = vsel %vm3613_vm12, %v1040_v5, %v1051_v18  ;;  %v1078_v15 = vpop.permute.xlu1 %1077  ;;  %v1076_v17 = vpop.permute.xlu0 %1075  ;;  %1861 = vmatpush2.bf16.msra.mxu0 %v2386_v10  ;;  %v1824_v19 = vsel %vm294_vm0, %v2395_v12, 0 }
 0x10c   : > { %v1084_v7 = vrot.slane %v1078_v15, 4  ;;  %v1083_v33 = vrot.slane %v1076_v17, 4  ;;  %1900 = vmatpush2.bf16.msra.mxu1 %v1824_v19 }
 0x10e   : > { %v1087_v38 = vsel %vm294_vm0, %v1083_v33, %v1084_v7 }
 0x10f   : > { %v1089_v2 = vsel %vm3611_vm14, %v1076_v17, %v1087_v38  ;;  %v3253_v20 = vpop.permute.xlu1 %1151  ;;  %v3255_v4 = vpop.permute.xlu0 %1115 }
 0x110   : > { %v3615_v47 = vrot.slane %v3253_v20, 4  ;;  %v3614_v51 = vrot.slane %v3255_v4, 4  ;;  %v2380_v40 = vcombine.high %v1053_v57, %v1089_v2  ;;  %v2379_v39 = vcombine.low %v1053_v57, %v1089_v2 }
 0x112   : > { %v1162_v56 = vsel %vm294_vm0, %v1156_v50, %v3615_v47  ;;  %v1126_v5 = vsel %vm294_vm0, %v1120_v23, %v3614_v51  ;;  %1862 = vmatprep.subr.bf16.mxu0 %v2380_v40 }
 0x113   : > { %v1163_v45 = vsel %vm3608_vm10, %v1150_v16, %v1162_v56  ;;  %v1127_v46 = vsel %vm3609_vm15, %v1114_v21, %v1126_v5  ;;  %v970_v8 = vpop.permute.xlu1 %969  ;;  %v968_v10 = vpop.permute.xlu0 %967  ;;  %1863 = vmatpush2.bf16.msra.mxu0 %v2379_v39  ;;  %vm3618_vm10 = vcmask 375808   ;;  %vm908_vm15 = vcmask 457728  }
 0x114   : > { %v976_v12 = vrot.slane %v970_v8, 4  ;;  %v975_v18 = vrot.slane %v968_v10, 4  ;;  %v2389_v57 = vcombine.high %v1127_v46, %v1163_v45  ;;  %v2388_v17 = vcombine.low %v1127_v46, %v1163_v45 }
 0x116   : > { %v979_v19 = vsel %vm294_vm0, %v975_v18, %v976_v12  ;;  %1901 = vmatprep.subr.bf16.mxu1 %v2389_v57 }
 0x117   : > { %v981_v50 = vsel %vm980_vm13, %v968_v10, %v979_v19  ;;  %v1006_v33 = vpop.permute.xlu1 %1005  ;;  %v1004_v23 = vpop.permute.xlu0 %1003  ;;  %1902 = vmatpush2.bf16.msra.mxu1 %v2388_v17 }
 0x118   : > { %v1012_v38 = vrot.slane %v1006_v33, 4  ;;  %v1011_v16 = vrot.slane %v1004_v23, 4 }
 0x11a   : > { %v1015_v21 = vsel %vm294_vm0, %v1011_v16, %v1012_v38 }
 0x11b   : > { %v1017_v2 = vsel %vm3618_vm10, %v1004_v23, %v1015_v21  ;;  %v3271_v40 = vpop.permute.xlu1 %1079  ;;  %v3273_v39 = vpop.permute.xlu0 %1043 }
 0x11c   : > { %v3610_v56 = vrot.slane %v3271_v40, 4  ;;  %v3612_v5 = vrot.slane %v3273_v39, 4  ;;  %v2373_v45 = vcombine.high %v981_v50, %v1017_v2  ;;  %v2372_v46 = vcombine.low %v981_v50, %v1017_v2 }
 0x11e   : > { %v1090_v10 = vsel %vm294_vm0, %v1084_v7, %v3610_v56  ;;  %v1054_v18 = vsel %vm294_vm0, %v1048_v48, %v3612_v5  ;;  %1864 = vmatprep.subr.bf16.mxu0 %v2373_v45 }
 0x11f   : > { %v1091_v57 = vsel %vm3611_vm14, %v1078_v15, %v1090_v10  ;;  %v1055_v17 = vsel %vm3613_vm12, %v3244_v63, %v1054_v18  ;;  %v898_v19 = vpop.permute.xlu1 %897  ;;  %v896_v23 = vpop.permute.xlu0 %895  ;;  %1865 = vmatpush2.bf16.msra.mxu0 %v2372_v46  ;;  %vm944_vm14 = vcmask 449536   ;;  %vm836_vm12 = vcmask 56320  }
 0x120   : > { %v904_v16 = vrot.slane %v898_v19, 4  ;;  %v903_v50 = vrot.slane %v896_v23, 4  ;;  %v2382_v21 = vcombine.high %v1055_v17, %v1091_v57  ;;  %v2381_v2 = vcombine.low %v1055_v17, %v1091_v57 }
 0x122   : > { %v907_v7 = vsel %vm294_vm0, %v903_v50, %v904_v16  ;;  %1903 = vmatprep.subr.bf16.mxu1 %v2382_v21 }
 0x123   : > { %v909_v56 = vsel %vm908_vm15, %v896_v23, %v907_v7  ;;  %v934_v48 = vpop.permute.xlu1 %933  ;;  %v932_v45 = vpop.permute.xlu0 %931  ;;  %1904 = vmatpush2.bf16.msra.mxu1 %v2381_v2 }
 0x124   : > { %v940_v15 = vrot.slane %v934_v48, 4  ;;  %v939_v10 = vrot.slane %v932_v45, 4 }
 0x126   : > { %v943_v63 = vsel %vm294_vm0, %v939_v10, %v940_v15 }
 0x127   : > { %v945_v18 = vsel %vm944_vm14, %v932_v45, %v943_v63  ;;  %v3290_v46 = vpop.permute.xlu1 %1007  ;;  %v3292_v5 = vpop.permute.xlu0 %971 }
 0x128   : > { %v3617_v57 = vrot.slane %v3290_v46, 4  ;;  %v3619_v17 = vrot.slane %v3292_v5, 4  ;;  %v2366_v50 = vcombine.high %v909_v56, %v945_v18  ;;  %v2365_v23 = vcombine.low %v909_v56, %v945_v18 }
 0x12a   : > { %v1018_v21 = vsel %vm294_vm0, %v1012_v38, %v3617_v57  ;;  %v982_v2 = vsel %vm294_vm0, %v976_v12, %v3619_v17  ;;  %1866 = vmatprep.subr.bf16.mxu0 %v2366_v50  ;;  %v3324_v17 = vcombine.low %v3010_v60, %v3010_v60 }
 0x12b   : > { %v1019_v7 = vsel %vm3618_vm10, %v1006_v33, %v1018_v21  ;;  %v983_v45 = vsel %vm980_vm13, %v970_v8, %v982_v2  ;;  %v826_v10 = vpop.permute.xlu1 %825  ;;  %v824_v63 = vpop.permute.xlu0 %823  ;;  %1867 = vmatpush2.bf16.msra.mxu0 %v2365_v23  ;;  %vm872_vm10 = vcmask 48128  }
 0x12c   : > { %v832_v51 = vrot.slane %v826_v10, 4  ;;  %v831_v47 = vrot.slane %v824_v63, 4  ;;  %v2375_v56 = vcombine.high %v983_v45, %v1019_v7  ;;  %v2374_v18 = vcombine.low %v983_v45, %v1019_v7 }
 0x12e   : > { %v835_v42 = vsel %vm294_vm0, %v831_v47, %v832_v51  ;;  %1905 = vmatprep.subr.bf16.mxu1 %v2375_v56 }
 0x12f   : > { %v837_v38 = vsel %vm836_vm12, %v824_v63, %v835_v42  ;;  %v862_v57 = vpop.permute.xlu1 %861  ;;  %v860_v12 = vpop.permute.xlu0 %859  ;;  %1906 = vmatpush2.bf16.msra.mxu1 %v2374_v18 }
 0x130   : > { %v868_v50 = vrot.slane %v862_v57, 4  ;;  %v867_v33 = vrot.slane %v860_v12, 4 }
 0x132   : > { %v871_v8 = vsel %vm294_vm0, %v867_v33, %v868_v50 }
 0x133   : > { %v873_v21 = vsel %vm872_vm10, %v860_v12, %v871_v8  ;;  %v3308_v23 = vpop.permute.xlu1 %935  ;;  %v3310_v2 = vpop.permute.xlu0 %899 }
 0x134   : > { %v941_v7 = vrot.slane %v3308_v23, 4  ;;  %v905_v47 = vrot.slane %v3310_v2, 4  ;;  %v2359_v45 = vcombine.high %v837_v38, %v873_v21  ;;  %v2358_v42 = vcombine.low %v837_v38, %v873_v21 }
 0x136   : > { %v946_v63 = vsel %vm294_vm0, %v940_v15, %v941_v7  ;;  %v910_v56 = vsel %vm294_vm0, %v904_v16, %v905_v47  ;;  %1868 = vmatprep.subr.bf16.mxu0 %v2359_v45 }
 0x137   : > { %v947_v18 = vsel %vm944_vm14, %v934_v48, %v946_v63  ;;  %v911_v12 = vsel %vm908_vm15, %v898_v19, %v910_v56  ;;  %v794_v33 = vpop.permute.xlu1 %793  ;;  %v758_v8 = vpop.permute.xlu0 %757  ;;  %1869 = vmatpush2.bf16.msra.mxu0 %v2358_v42 }
 0x138   : > { %v798_v38 = vrot.slane %v794_v33, 4  ;;  %v762_v21 = vrot.slane %v758_v8, 4  ;;  %v2368_v49 = vcombine.high %v911_v12, %v947_v18  ;;  %v2367_v15 = vcombine.low %v911_v12, %v947_v18 }
 0x13a   : > { %v804_v16 = vsel %vm294_vm0, %v797_v36, %v798_v38  ;;  %v806_v45 = vsel %vm800_vm1, %v794_v33, %v798_v38  ;;  %v768_v19 = vsel %vm294_vm0, %v761_v37, %v762_v21  ;;  %v770_v48 = vsel %vm764_vm2, %v758_v8, %v762_v21  ;;  %1907 = vmatprep.subr.bf16.mxu1 %v2368_v49 }
 0x13b   : > { %v805_v60 = vsel %vm800_vm1, %v2965_v34, %v804_v16  ;;  %814 = vst [vmem:[#allocation2 + $0x1bc] sm:$0xf] %v806_v45  ;;  %v769_v42 = vsel %vm764_vm2, %v2967_v35, %v768_v19  ;;  %778 = vst [vmem:[#allocation2 + $0x1a0] sm:$0xf] %v770_v48  ;;  %v3338_v63 = vpop.permute.xlu1 %863  ;;  %v3340_v36 = vpop.permute.xlu0 %827  ;;  %1908 = vmatpush2.bf16.msra.mxu1 %v2367_v15  ;;  %1871 = vmatmul.mubr.bf16.vlgmr.msra.gmra.mxu0 %v3324_v17  ;;  %vm3640_vm1 = vcmask 883712  }
 0x13c   : > { %v869_v37 = vrot.slane %v3338_v63, 4  ;;  %v833_v56 = vrot.slane %v3340_v36, 4  ;;  %v2355_v49 = vcombine.low %v769_v42, %v805_v60  ;;  %v2356_v18 = vcombine.high %v769_v42, %v805_v60  ;;  %2405 = vmatprep.mubr.msk.bf16.mxu0 %vm1812_vm7, %v3020_v6  ;;  %vm3641_vm2 = vmmov %vm3640_vm1 }
 0x13e   : > { %v874_v34 = vsel %vm294_vm0, %v868_v50, %v869_v37  ;;  %v838_v35 = vsel %vm294_vm0, %v832_v51, %v833_v56  ;;  %1920 = vmatprep.subr.bf16.mxu0 %v2356_v18 }
 0x13f   : > { %v875_v12 = vsel %vm872_vm10, %v862_v57, %v874_v34  ;;  %v839_v33 = vsel %vm836_vm12, %v826_v10, %v838_v35  ;;  %v722_v8 = vpop.permute.xlu1 %721  ;;  %v686_v38 = vpop.permute.xlu0 %685  ;;  %1921 = vmatpush1.bf16.msra.mxu0 %v2355_v49 }
 0x140   : > { %v726_v21 = vrot.slane %v722_v8, 4  ;;  %v690_v15 = vrot.slane %v686_v38, 4  ;;  %v2361_v16 = vcombine.high %v839_v33, %v875_v12  ;;  %v2360_v45 = vcombine.low %v839_v33, %v875_v12 }
 0x142   : > { %v732_v50 = vsel %vm294_vm0, %v725_v61, %v726_v21  ;;  %v734_v19 = vsel %vm728_vm4, %v722_v8, %v726_v21  ;;  %v696_v51 = vsel %vm294_vm0, %v689_v62, %v690_v15  ;;  %v698_v57 = vsel %vm692_vm3, %v686_v38, %v690_v15  ;;  %1909 = vmatprep.subr.bf16.mxu1 %v2361_v16  ;;  %v2518_v62 = vld [vmem:[#allocation2 + $0x1a0] ss:$28 sps:$4 sm:$0xff]  }
 0x143   : > { %v733_v10 = vsel %vm728_vm4, %v3003_v58, %v732_v50  ;;  %742 = vst [vmem:[#allocation2 + $0x184] sm:$0xf] %v734_v19  ;;  %v697_v48 = vsel %vm692_vm3, %v3005_v59, %v696_v51  ;;  %706 = vst [vmem:[#allocation2 + $0x168] sm:$0xf] %v698_v57  ;;  %v650_v60 = vpop.permute.xlu1 %649  ;;  %v614_v42 = vpop.permute.xlu0 %613  ;;  %1910 = vmatpush2.bf16.msra.mxu1 %v2360_v45  ;;  %vm3642_vm3 = vcmask 949248   ;;  %vm3643_vm4 = vcmask 957440  }
 0x144   : > { %v654_v61 = vrot.slane %v650_v60, 4  ;;  %v618_v49 = vrot.slane %v614_v42, 4  ;;  %v2348_v18 = vcombine.low %v697_v48, %v733_v10  ;;  %v2349_v34 = vcombine.high %v697_v48, %v733_v10  ;;  %1961 = vmatprep.subr.bf16.mxu1 %v2671_v26 }
 0x146   : > { %v660_v35 = vsel %vm294_vm0, %v653_v27, %v654_v61  ;;  %v662_v58 = vsel %vm656_vm6, %v650_v60, %v654_v61  ;;  %v624_v59 = vsel %vm294_vm0, %v617_v28, %v618_v49  ;;  %v626_v12 = vsel %vm620_vm5, %v614_v42, %v618_v49  ;;  %1912 = vmatmul.mubr.bf16.vlgmr.msra.gmra.mxu1 %v3324_v17 }
 0x147   : > { %v661_v33 = vsel %vm656_vm6, %v3058_v24, %v660_v35  ;;  %670 = vst [vmem:[#allocation2 + $0x14c] sm:$0xf] %v662_v58  ;;  %v625_v8 = vsel %vm620_vm5, %v3060_v25, %v624_v59  ;;  %634 = vst [vmem:[#allocation2 + $0x130] sm:$0xf] %v626_v12  ;;  %v578_v38 = vpop.permute.xlu1 %577  ;;  %v542_v27 = vpop.permute.xlu0 %541  ;;  %1922 = vmatprep.subr.bf16.mxu0 %v2349_v34  ;;  %1962 = vmatpush1.bf16.msra.mxu1 %v2518_v62 }
 0x148   : > { %v582_v21 = vrot.slane %v578_v38, 4  ;;  %v546_v15 = vrot.slane %v542_v27, 4  ;;  %1923 = vmatpush1.bf16.msra.mxu0 %v2348_v18  ;;  %v2341_v28 = vcombine.low %v625_v8, %v661_v33  ;;  %v2342_v16 = vcombine.high %v625_v8, %v661_v33  ;;  %1963 = vmatprep.subr.bf16.mxu1 %v2671_v26  ;;  %vm3644_vm5 = vmmov %vm3642_vm3 }
 0x149   : > { %2406 = vmatprep.mubr.msk.bf16.mxu1 %vm1812_vm7, %v3020_v6  ;;  %vm3645_vm6 = vmmov %vm3643_vm4  ;;  %vm3646_vm7 = vcmask 965632  }
 0x14a   : > { %v588_v24 = vsel %vm294_vm0, %v581_v54, %v582_v21  ;;  %v590_v25 = vsel %vm584_vm9, %v578_v38, %v582_v21  ;;  %v552_v45 = vsel %vm294_vm0, %v545_v55, %v546_v15  ;;  %v554_v50 = vsel %vm548_vm8, %v542_v27, %v546_v15  ;;  %1924 = vmatprep.subr.bf16.mxu0 %v2342_v16  ;;  %v2519_v19 = vld [vmem:[#allocation2 + $0x168] ss:$28 sps:$4 sm:$0xff]  }
 0x14b   : > { %v589_v51 = vsel %vm584_vm9, %v3098_v52, %v588_v24  ;;  %598 = vst [vmem:[#allocation2 + $0x114] sm:$0xf] %v590_v25  ;;  %v553_v6 = vsel %vm548_vm8, %v3100_v53, %v552_v45  ;;  %562 = vst [vmem:[#allocation2 + $0xf8] sm:$0xf] %v554_v50  ;;  %v506_v57 = vpop.permute.xlu1 %505  ;;  %v470_v54 = vpop.permute.xlu0 %469  ;;  %1964 = vmatpush1.bf16.msra.mxu1 %v2519_v19  ;;  %vm3647_vm8 = vcmask 1031168  }
 0x14c   : > { %v510_v10 = vrot.slane %v506_v57, 4  ;;  %v474_v48 = vrot.slane %v470_v54, 4  ;;  %1925 = vmatpush1.bf16.msra.mxu0 %v2341_v28  ;;  %v2334_v60 = vcombine.low %v553_v6, %v589_v51  ;;  %v2335_v55 = vcombine.high %v553_v6, %v589_v51  ;;  %1965 = vmatprep.subr.bf16.mxu1 %v2671_v26  ;;  %vm3648_vm9 = vmmov %vm3646_vm7 }
 0x14e   : > { %v516_v42 = vsel %vm294_vm0, %v509_v31, %v510_v10  ;;  %v518_v52 = vsel %vm512_vm11, %v506_v57, %v510_v10  ;;  %v480_v53 = vsel %vm294_vm0, %v473_v32, %v474_v48  ;;  %v482_v61 = vsel %vm3640_vm1, %v470_v54, %v474_v48  ;;  %1926 = vmatprep.subr.bf16.mxu0 %v2335_v55  ;;  %v2520_v49 = vld [vmem:[#allocation2 + $0x130] ss:$28 sps:$4 sm:$0xff]  }
 0x14f   : > { %v517_v18 = vsel %vm512_vm11, %v3140_v29, %v516_v42  ;;  %526 = vst [vmem:[#allocation2 + $0xdc] sm:$0xf] %v518_v52  ;;  %v481_v34 = vsel %vm3641_vm2, %v3142_v30, %v480_v53  ;;  %490 = vst [vmem:[#allocation2 + $0xc0] sm:$0xf] %v482_v61  ;;  %v434_v62 = vpop.permute.xlu1 %433  ;;  %v398_v31 = vpop.permute.xlu0 %397  ;;  %1966 = vmatpush1.bf16.msra.mxu1 %v2520_v49  ;;  %v3650_v10 = vrot.slane %v3235_v11, 4  ;;  %vm3651_vm1 = vcmask 277504  }
 0x150   : > { %v438_v35 = vrot.slane %v434_v62, 4  ;;  %v402_v58 = vrot.slane %v398_v31, 4  ;;  %1927 = vmatpush1.bf16.msra.mxu0 %v2334_v60  ;;  %v2327_v59 = vcombine.low %v481_v34, %v517_v18  ;;  %v2328_v32 = vcombine.high %v481_v34, %v517_v18  ;;  %1967 = vmatprep.subr.bf16.mxu1 %v2671_v26  ;;  %vm3649_vm11 = vmmov %vm3647_vm8 }
 0x151   : > { %v3652_v60 = vrot.slane %v3216_v3, 4  ;;  %vm3653_vm2 = vcmask 1039360  }
 0x152   : > { %v444_v12 = vsel %vm294_vm0, %v437_v13, %v438_v35  ;;  %v446_v29 = vsel %vm3642_vm3, %v434_v62, %v438_v35  ;;  %v408_v30 = vsel %vm294_vm0, %v401_v14, %v402_v58  ;;  %v410_v33 = vsel %vm3643_vm4, %v398_v31, %v402_v58  ;;  %1928 = vmatprep.subr.bf16.mxu0 %v2328_v32  ;;  %v2521_v8 = vld [vmem:[#allocation2 + $0xf8] ss:$28 sps:$4 sm:$0xff]   ;;  %vm3654_vm3 = vmmov %vm3651_vm1 }
 0x153   : > { %v445_v38 = vsel %vm3644_vm5, %v3174_v9, %v444_v12  ;;  %454 = vst [vmem:[#allocation2 + $0xa4] sm:$0xf] %v446_v29  ;;  %v409_v27 = vsel %vm3645_vm6, %v3176_v1, %v408_v30  ;;  %418 = vst [vmem:[#allocation2 + $0x88] sm:$0xf] %v410_v33  ;;  %v362_v21 = vpop.permute.xlu1 %361  ;;  %v326_v13 = vpop.permute.xlu0 %325  ;;  %1968 = vmatpush1.bf16.msra.mxu1 %v2521_v8  ;;  %v3656_v35 = vrot.slane %v3253_v20, 4  ;;  %vm3657_vm5 = vcmask 285696  }
 0x154   : > { %v366_v15 = vrot.slane %v362_v21, 4  ;;  %v330_v28 = vrot.slane %v326_v13, 4  ;;  %1929 = vmatpush1.bf16.msra.mxu0 %v2327_v59  ;;  %v2320_v16 = vcombine.low %v409_v27, %v445_v38  ;;  %v2321_v14 = vcombine.high %v409_v27, %v445_v38  ;;  %1969 = vmatprep.subr.bf16.mxu1 %v2671_v26  ;;  %vm3655_vm4 = vmmov %vm3653_vm2 }
 0x155   : > { %vm3659_vm6 = vcmask 293888  }
 0x156   : > { %v372_v24 = vsel %vm294_vm0, %v365_v43, %v366_v15  ;;  %v374_v9 = vsel %vm3646_vm7, %v362_v21, %v366_v15  ;;  %v336_v1 = vsel %vm294_vm0, %v329_v44, %v330_v28  ;;  %v338_v25 = vsel %vm3647_vm8, %v326_v13, %v330_v28  ;;  %1930 = vmatprep.subr.bf16.mxu0 %v2321_v14  ;;  %v2522_v45 = vld [vmem:[#allocation2 + $0xc0] ss:$28 sps:$4 sm:$0xff]   ;;  %vm3660_vm7 = vmmov %vm3657_vm5 }
 0x157   : > { %v373_v50 = vsel %vm3648_vm9, %v3197_v41, %v372_v24  ;;  %382 = vst [vmem:[#allocation2 + $0x6c] sm:$0xf] %v374_v9  ;;  %v337_v19 = vsel %vm3649_vm11, %v3199_v0, %v336_v1  ;;  %346 = vst [vmem:[#allocation2 + $0x50] sm:$0xf] %v338_v25  ;;  %v1190_v51 = vpop.permute.xlu1 %1189  ;;  %v289_v43 = vpop.permute.xlu0 %288  ;;  %1970 = vmatpush1.bf16.msra.mxu1 %v2522_v45  ;;  %v3662_v13 = vrot.slane %v3271_v40, 4  ;;  %vm3663_vm9 = vcmask 359424  }
 0x158   : > { %v1194_v6 = vrot.slane %v1190_v51, 4  ;;  %v293_v57 = vrot.slane %v289_v43, 4  ;;  %1931 = vmatpush1.bf16.msra.mxu0 %v2320_v16  ;;  %v2313_v54 = vcombine.low %v337_v19, %v373_v50  ;;  %v2314_v44 = vcombine.high %v337_v19, %v373_v50  ;;  %1971 = vmatprep.subr.bf16.mxu1 %v2671_v26  ;;  %vm3661_vm8 = vmmov %vm3659_vm6 }
 0x159   : > { %vm3665_vm11 = vcmask 367616  }
 0x15a   : > { %v1200_v48 = vsel %vm294_vm0, %v3650_v10, %v1194_v6  ;;  %v1202_v41 = vsel %vm3651_vm1, %v1190_v51, %v1194_v6  ;;  %v300_v0 = vsel %vm294_vm0, %v3652_v60, %v293_v57  ;;  %v302_v55 = vsel %vm3653_vm2, %v289_v43, %v293_v57  ;;  %1932 = vmatprep.subr.bf16.mxu0 %v2314_v44  ;;  %v2523_v42 = vld [vmem:[#allocation2 + $0x88] ss:$28 sps:$4 sm:$0xff]   ;;  %vm3666_vm1 = vmmov %vm3663_vm9 }
 0x15b   : > { %v1201_v52 = vsel %vm3654_vm3, %v3235_v11, %v1200_v48  ;;  %1210 = vst [vmem:[#allocation2 + $0x2f0] sm:$0xf] %v1202_v41  ;;  %v301_v53 = vsel %vm3655_vm4, %v3216_v3, %v300_v0  ;;  %310 = vst [vmem:[#allocation2 + $0x34] sm:$0xf] %v302_v55  ;;  %v1154_v61 = vpop.permute.xlu1 %1153  ;;  %v1118_v49 = vpop.permute.xlu0 %1117  ;;  %1972 = vmatpush1.bf16.msra.mxu1 %v2523_v42  ;;  %v3658_v3 = vrot.slane %v3255_v4, 4  ;;  %vm3669_vm3 = vcmask 375808  }
 0x15c   : > { %v1158_v18 = vrot.slane %v1154_v61, 4  ;;  %v1122_v34 = vrot.slane %v1118_v49, 4  ;;  %1933 = vmatpush1.bf16.msra.mxu0 %v2313_v54  ;;  %v2306_v62 = vcombine.low %v3132_v22, %v301_v53  ;;  %v2307_v31 = vcombine.high %v3132_v22, %v301_v53  ;;  %1973 = vmatprep.subr.bf16.mxu1 %v2671_v26  ;;  %vm3667_vm2 = vmmov %vm3665_vm11 }
 0x15d   : > { %v2398_v8 = vcombine.high %v1201_v52, %v1201_v52  ;;  %v2397_v38 = vcombine.low %v1201_v52, %v1201_v52  ;;  %v3670_v54 = vrot.slane %v3292_v5, 4  ;;  %vm3671_vm4 = vmmov %vm3669_vm3 }
 0x15e   : > { %v1164_v11 = vsel %vm294_vm0, %v3656_v35, %v1158_v18  ;;  %v1166_v58 = vsel %vm3657_vm5, %v1154_v61, %v1158_v18  ;;  %v1128_v59 = vsel %vm294_vm0, %v3658_v3, %v1122_v34  ;;  %v1130_v32 = vsel %vm3659_vm6, %v1118_v49, %v1122_v34  ;;  %1934 = vmatprep.subr.bf16.mxu0 %v2307_v31  ;;  %v2524_v12 = vld [vmem:[#allocation2 + $0x50] ss:$28 sps:$4 sm:$0xff]  }
 0x15f   : > { %v1165_v29 = vsel %vm3660_vm7, %v3253_v20, %v1164_v11  ;;  %1174 = vst [vmem:[#allocation2 + $0x2d4] sm:$0xf] %v1166_v58  ;;  %v1129_v22 = vsel %vm3661_vm8, %v3255_v4, %v1128_v59  ;;  %1138 = vst [vmem:[#allocation2 + $0x2b8] sm:$0xf] %v1130_v32  ;;  %v1082_v30 = vpop.permute.xlu1 %1081  ;;  %v1046_v33 = vpop.permute.xlu0 %1045  ;;  %1974 = vmatpush1.bf16.msra.mxu1 %v2524_v12  ;;  %v3664_v4 = vrot.slane %v3273_v39, 4  ;;  %v1830_v45 = vsel %vm294_vm0, %v2397_v38, 0 }
 0x160   : > { %v1086_v27 = vrot.slane %v1082_v30, 4  ;;  %v1050_v21 = vrot.slane %v1046_v33, 4  ;;  %1935 = vmatpush1.bf16.msra.mxu0 %v2306_v62  ;;  %1975 = vmatprep.subr.bf16.mxu1 %v2671_v26  ;;  %v2391_v50 = vcombine.high %v1129_v22, %v1165_v29  ;;  %v2390_v6 = vcombine.low %v1129_v22, %v1165_v29 }
 0x161   : > { %2404 = vmatprep.subr.msk.bf16.mxu0 %vm294_vm0, %v2398_v8 }
 0x162   : > { %v1092_v20 = vsel %vm294_vm0, %v3662_v13, %v1086_v27  ;;  %v1094_v15 = vsel %vm3663_vm9, %v1082_v30, %v1086_v27  ;;  %v1056_v28 = vsel %vm294_vm0, %v3664_v4, %v1050_v21  ;;  %v1058_v16 = vsel %vm3665_vm11, %v1046_v33, %v1050_v21  ;;  %v2525_v14 = vld [vmem:[#allocation2 + $0x18] ss:$28 sps:$4 sm:$0xff]   ;;  %v2526_v19 = vld [vmem:[#allocation2 + $0x2f0] ss:$0 sps:$4 sm:$0xff]  }
 0x163   : > { %v1093_v24 = vsel %vm3666_vm1, %v3271_v40, %v1092_v20  ;;  %1102 = vst [vmem:[#allocation2 + $0x29c] sm:$0xf] %v1094_v15  ;;  %v1057_v9 = vsel %vm3667_vm2, %v3273_v39, %v1056_v28  ;;  %1066 = vst [vmem:[#allocation2 + $0x280] sm:$0xf] %v1058_v16  ;;  %v1010_v1 = vpop.permute.xlu1 %1009  ;;  %v974_v25 = vpop.permute.xlu0 %973  ;;  %1976 = vmatpush1.bf16.msra.mxu1 %v2525_v14  ;;  %v3668_v40 = vrot.slane %v3290_v46, 4  ;;  %v1836_v55 = vsel %vm294_vm0, %v2526_v19, 0 }
 0x164   : > { %v1014_v51 = vrot.slane %v1010_v1, 4  ;;  %v978_v43 = vrot.slane %v974_v25, 4  ;;  %1941 = vmatpush2.bf16.msra.mxu0 %v1830_v45  ;;  %1981 = vmatprep.subr.bf16.mxu1 %v2671_v26  ;;  %v2384_v42 = vcombine.high %v1057_v9, %v1093_v24  ;;  %v2383_v61 = vcombine.low %v1057_v9, %v1093_v24 }
 0x165   : > { %1942 = vmatprep.subr.bf16.mxu0 %v2391_v50  ;;  %v2003_v16 = vlaneseq }
 0x166   : > { %v1020_v57 = vsel %vm294_vm0, %v3668_v40, %v1014_v51  ;;  %v1022_v39 = vsel %vm3669_vm3, %v1010_v1, %v1014_v51  ;;  %v984_v44 = vsel %vm294_vm0, %v3670_v54, %v978_v43  ;;  %v986_v10 = vsel %vm980_vm13, %v974_v25, %v978_v43  ;;  %v2527_v34 = vld [vmem:[#allocation2 + $0x2b8] ss:$28 sps:$4 sm:$0xff]  }
 0x167   : > { %v1021_v48 = vsel %vm3671_vm4, %v3290_v46, %v1020_v57  ;;  %1030 = vst [vmem:[#allocation2 + $0x264] sm:$0xf] %v1022_v39  ;;  %v985_v41 = vsel %vm980_vm13, %v3292_v5, %v984_v44  ;;  %994 = vst [vmem:[#allocation2 + $0x248] sm:$0xf] %v986_v10  ;;  %v938_v60 = vpop.permute.xlu1 %937  ;;  %v902_v0 = vpop.permute.xlu0 %901  ;;  %1982 = vmatpush2.bf16.msra.mxu1 %v1836_v55  ;;  %v2004_v14 = vshrl.u32 %v2003_v16, 7 }
 0x168   : > { %v942_v52 = vrot.slane %v938_v60, 4  ;;  %v906_v53 = vrot.slane %v902_v0, 4  ;;  %1943 = vmatpush2.bf16.msra.mxu0 %v2390_v6  ;;  %1983 = vmatprep.subr.bf16.mxu1 %v2671_v26  ;;  %v2376_v59 = vcombine.low %v985_v41, %v1021_v48 }
 0x169   : > { %1944 = vmatprep.subr.bf16.mxu0 %v2384_v42  ;;  %v2005_v24 = vsub.s32 0, %v2004_v14  ;;  %v2009_v9 = vsub.s32 1, %v2004_v14  ;;  %v2013_v45 = vsub.s32 2, %v2004_v14  ;;  %v2017_v51 = vsub.s32 3, %v2004_v14 }
 0x16a   : > { %v948_v46 = vsel %vm294_vm0, %v941_v7, %v942_v52  ;;  %v950_v5 = vsel %vm944_vm14, %v938_v60, %v942_v52  ;;  %v912_v49 = vsel %vm294_vm0, %v905_v47, %v906_v53  ;;  %v914_v18 = vsel %vm908_vm15, %v902_v0, %v906_v53  ;;  %v2528_v12 = vld [vmem:[#allocation2 + $0x280] ss:$28 sps:$4 sm:$0xff]  }
 0x16b   : > { %v949_v62 = vsel %vm944_vm14, %v3308_v23, %v948_v46  ;;  %958 = vst [vmem:[#allocation2 + $0x22c] sm:$0xf] %v950_v5  ;;  %v913_v31 = vsel %vm908_vm15, %v3310_v2, %v912_v49  ;;  %922 = vst [vmem:[#allocation2 + $0x210] sm:$0xf] %v914_v18  ;;  %v866_v35 = vpop.permute.xlu1 %865  ;;  %v830_v11 = vpop.permute.xlu0 %829  ;;  %v2377_v7 = vcombine.high %v985_v41, %v1021_v48  ;;  %1984 = vmatpush2.bf16.msra.mxu1 %v2527_v34 }
 0x16c   : > { %v870_v58 = vrot.slane %v866_v35, 4  ;;  %v834_v3 = vrot.slane %v830_v11, 4  ;;  %1945 = vmatpush2.bf16.msra.mxu0 %v2383_v61  ;;  %1985 = vmatprep.subr.bf16.mxu1 %v2671_v26  ;;  %v2370_v30 = vcombine.high %v913_v31, %v949_v62  ;;  %v2021_v57 = vsub.s32 4, %v2004_v14 }
 0x16d   : > { %1946 = vmatprep.subr.bf16.mxu0 %v2377_v7  ;;  %v2025_v39 = vsub.s32 5, %v2004_v14  ;;  %v2029_v48 = vsub.s32 6, %v2004_v14  ;;  %v2084_v7 = vld [vmem:[%s3584_s2] sm:$0xff] }
 0x16e   : > { %v876_v23 = vsel %vm294_vm0, %v869_v37, %v870_v58  ;;  %v878_v47 = vsel %vm872_vm10, %v866_v35, %v870_v58  ;;  %v840_v2 = vsel %vm294_vm0, %v833_v56, %v834_v3  ;;  %v842_v32 = vsel %vm836_vm12, %v830_v11, %v834_v3  ;;  %v2529_v33 = vld [vmem:[#allocation2 + $0x248] ss:$28 sps:$4 sm:$0xff]  }
 0x16f   : > { %v877_v29 = vsel %vm872_vm10, %v3338_v63, %v876_v23  ;;  %886 = vst [vmem:[#allocation2 + $0x1f4] sm:$0xf] %v878_v47  ;;  %v841_v22 = vsel %vm836_vm12, %v3340_v36, %v840_v2  ;;  %850 = vst [vmem:[#allocation2 + $0x1d8] sm:$0xf] %v842_v32  ;;  %1986 = vmatpush2.bf16.msra.mxu1 %v2528_v12  ;;  %v2369_v37 = vcombine.low %v913_v31, %v949_v62  ;;  %v2672_v58 = vmov 1  }
 0x170   : > { %1947 = vmatpush2.bf16.msra.mxu0 %v2376_v59  ;;  %1987 = vmatprep.subr.bf16.mxu1 %v2671_v26  ;;  %v2363_v56 = vcombine.high %v841_v22, %v877_v29  ;;  %v2362_v63 = vcombine.low %v841_v22, %v877_v29 }
 0x171   : > { %1948 = vmatprep.subr.bf16.mxu0 %v2370_v30  ;;  %2514 = vset.pattern.permute.xlu1 %v2672_v58 }
 0x172   : > { %v2530_v8 = vld [vmem:[#allocation2 + $0x210] ss:$28 sps:$4 sm:$0xff]  }
 0x173   : > { %1988 = vmatpush2.bf16.msra.mxu1 %v2529_v33 }
 0x174   : > { %1949 = vmatpush2.bf16.msra.mxu0 %v2369_v37  ;;  %1989 = vmatprep.subr.bf16.mxu1 %v2671_v26 }
 0x175   : > { %1950 = vmatprep.subr.bf16.mxu0 %v2363_v56 }
 0x176   : > { %v2531_v36 = vld [vmem:[#allocation2 + $0x1d8] ss:$28 sps:$4 sm:$0xff]  }
 0x177   : > { %1990 = vmatpush2.bf16.msra.mxu1 %v2530_v8 }
 0x178   : > { %1951 = vmatpush2.bf16.msra.mxu0 %v2362_v63  ;;  %1991 = vmatprep.subr.bf16.mxu1 %v2671_v26  ;;  %v2001_v26 = vld [vmem:[%s3585_s3] sm:$0xff] }
 0x179   : > { %v2006_v1 = vrot.slane %v2001_v26, %v2005_v24  ;;  %v2010_v25 = vrot.slane %v2001_v26, %v2009_v9  ;;  %v2014_v19 = vrot.slane %v2001_v26, %v2013_v45  ;;  %v2018_v40 = vrot.slane %v2001_v26, %v2017_v51 }
 0x17a   : > { %v2022_v10 = vrot.slane %v2001_v26, %v2021_v57  ;;  %v2026_v41 = vrot.slane %v2001_v26, %v2025_v39  ;;  %v2030_v42 = vrot.slane %v2001_v26, %v2029_v48 }
 0x17b   : > { %1953 = vmatmul.mubr.bf16.vlgmr.msra.gmra.mxu0 %v3324_v17  ;;  %1992 = vmatpush2.bf16.msra.mxu1 %v2531_v36 }
 0x17e   : > { %1994 = vmatmul.mubr.bf16.vlgmr.msra.gmra.mxu1 %v3324_v17 }
 0x1fb   : > { %v1872_v38 = vpop.f32.mrf.mxu0 }
 0x1fc   : > { %v2038_v17 = vmul.f32 %v2006_v1, %v1872_v38 }
 0x1fd   : > { %v1874_v27 = vpop.f32.mrf.mxu0 }
 0x1fe   : > { %v2039_v50 = vmul.f32 %v2010_v25, %v1874_v27 }
 0x1ff   : > { %v1876_v21 = vpop.f32.mrf.mxu0 }
 0x200   : > { %v2045_v43 = vadd.f32 %v2039_v50, %v2038_v17 }
 0x201   : > { %v1877_v13 = vpop.f32.mrf.mxu0 }
 0x206   : > { %v1913_v20 = vpop.f32.mrf.mxu1 }
 0x207   : > { %v2040_v6 = vmul.f32 %v2014_v19, %v1913_v20 }
 0x208   : > { %v1915_v15 = vpop.f32.mrf.mxu1 }
 0x209   : > { %v2046_v54 = vadd.f32 %v2045_v43, %v2040_v6  ;;  %v2041_v44 = vmul.f32 %v2018_v40, %v1915_v15 }
 0x20a   : > { %v1917_v4 = vpop.f32.mrf.mxu1 }
 0x20b   : > { %v2047_v0 = vadd.f32 %v2046_v54, %v2041_v44 }
 0x20c   : > { %v1918_v28 = vpop.f32.mrf.mxu1 }
 0x23b   : > { %v1954_v60 = vpop.f32.mrf.mxu0 }
 0x23c   : > { %v2042_v55 = vmul.f32 %v2022_v10, %v1954_v60 }
 0x23d   : > { %v1956_v52 = vpop.f32.mrf.mxu0 }
 0x23e   : > { %v2048_v53 = vadd.f32 %v2047_v0, %v2042_v55  ;;  %v2043_v61 = vmul.f32 %v2026_v41, %v1956_v52  ;;  %v1995_v5 = vpop.f32.mrf.mxu1 }
 0x23f   : > { %v1958_v46 = vpop.f32.mrf.mxu0  ;;  %v2044_v18 = vmul.f32 %v2030_v42, %v1995_v5 }
 0x240   : > { %v2049_v49 = vadd.f32 %v2048_v53, %v2043_v61  ;;  %v1997_v62 = vpop.f32.mrf.mxu1 }
 0x241   : > { %v1959_v34 = vpop.f32.mrf.mxu0 }
 0x242   : > { %v2050_v31 = vadd.f32 %v2049_v49, %v2044_v18  ;;  %v1998_v35 = vpop.f32.mrf.mxu1 }
 0x244   : > { %2051 = vadd.xlane.f32.xlu0 %v2050_v31  ;;  %v1999_v11 = vpop.f32.mrf.mxu1 }
 0x25a   : > { %2096 = vperm.xlu0 %2513, %v2084_v7  }
 0x25e   : > { %2515 = vset.pattern.permute.xlu0 %v2672_v58 }
 0x2cd   : > { %v2052_v3 = vpop.xlane.xlu0 %2051 }
 0x2ce   : > { %v2053_v59 = vmul.f32 0.001953125, %v2052_v3 }
 0x2d0   : > { %v2054_v23 = vsub.f32 %v1872_v38, %v2053_v59  ;;  %v2055_v47 = vsub.f32 %v1874_v27, %v2053_v59  ;;  %v2056_v2 = vsub.f32 %v1913_v20, %v2053_v59  ;;  %v2057_v32 = vsub.f32 %v1915_v15, %v2053_v59 }
 0x2d1   : > { %v2058_v12 = vsub.f32 %v1954_v60, %v2053_v59  ;;  %v2059_v37 = vsub.f32 %v1956_v52, %v2053_v59  ;;  %v2060_v8 = vsub.f32 %v1995_v5, %v2053_v59 }
 0x2d2   : > { %v2061_v29 = vmul.f32 %v2054_v23, %v2054_v23  ;;  %v2062_v22 = vmul.f32 %v2055_v47, %v2055_v47  ;;  %v2063_v30 = vmul.f32 %v2056_v2, %v2056_v2  ;;  %v2064_v33 = vmul.f32 %v2057_v32, %v2057_v32 }
 0x2d3   : > { %v2065_v36 = vmul.f32 %v2058_v12, %v2058_v12  ;;  %v2066_v4 = vmul.f32 %v2059_v37, %v2059_v37  ;;  %v2067_v14 = vmul.f32 %v2060_v8, %v2060_v8 }
 0x2d4   : > { %v2068_v56 = vmul.f32 %v2061_v29, %v2006_v1  ;;  %v2069_v63 = vmul.f32 %v2062_v22, %v2010_v25  ;;  %v2070_v21 = vmul.f32 %v2063_v30, %v2014_v19  ;;  %v2071_v28 = vmul.f32 %v2064_v33, %v2018_v40 }
 0x2d5   : > { %v2072_v38 = vmul.f32 %v2065_v36, %v2022_v10  ;;  %v2073_v20 = vmul.f32 %v2066_v4, %v2026_v41  ;;  %v2074_v24 = vmul.f32 %v2067_v14, %v2030_v42  ;;  %v2097_v50 = vpop.permute.xlu0 %2096 }
 0x2d6   : > { %v2075_v13 = vadd.f32 %v2069_v63, %v2068_v56 }
 0x2d8   : > { %v2076_v16 = vadd.f32 %v2075_v13, %v2070_v21 }
 0x2da   : > { %v2077_v27 = vadd.f32 %v2076_v16, %v2071_v28 }
 0x2dc   : > { %v2078_v15 = vadd.f32 %v2077_v27, %v2072_v38 }
 0x2de   : > { %v2079_v9 = vadd.f32 %v2078_v15, %v2073_v20 }
 0x2e0   : > { %v2080_v26 = vadd.f32 %v2079_v9, %v2074_v24 }
 0x2e2   : > { %2081 = vadd.xlane.f32.xlu1 %v2080_v26 }
 0x2f3   : > { %2107 = vperm.xlu1 %2514, %v2084_v7  }
 0x36b   : > { %v2082_v1 = vpop.xlane.xlu1 %2081 }
 0x36c   : > { %v2083_v25 = vmul.f32 0.001953125, %v2082_v1 }
 0x36e   : > { %v2085_v45 = vadd.f32 1e-05, %v2083_v25 }
 0x36f   : > { %v2108_v54 = vpop.permute.xlu1 %2107 }
 0x370   : > { %2532 = vrsqrt.f32 %v2085_v45 }
 0x37d   : > { %v2533_v17 = vpop.eup %2532 }
 0x37e   : > { %v2087_v19 = vmul.f32 %v2533_v17, %v2054_v23  ;;  %v2088_v51 = vmul.f32 %v2533_v17, %v2055_v47  ;;  %v2089_v43 = vmul.f32 %v2533_v17, %v2056_v2  ;;  %v2090_v6 = vmul.f32 %v2533_v17, %v2057_v32 }
 0x37f   : > { %v2091_v40 = vmul.f32 %v2533_v17, %v2058_v12  ;;  %v2092_v57 = vmul.f32 %v2533_v17, %v2059_v37  ;;  %v2093_v39 = vmul.f32 %v2533_v17, %v2060_v8 }
 0x380   : > { %v2099_v44 = vmul.f32 %v2097_v50, %v2087_v19  ;;  %v2100_v10 = vmul.f32 %v2097_v50, %v2088_v51  ;;  %v2101_v48 = vmul.f32 %v2097_v50, %v2089_v43  ;;  %v2102_v41 = vmul.f32 %v2097_v50, %v2090_v6 }
 0x381   : > { %v2103_v60 = vmul.f32 %v2097_v50, %v2091_v40  ;;  %v2104_v0 = vmul.f32 %v2097_v50, %v2092_v57  ;;  %v2105_v55 = vmul.f32 %v2097_v50, %v2093_v39 }
 0x382   : > { %v2110_v42 = vadd.f32 %v2108_v54, %v2099_v44  ;;  %v2111_v52 = vadd.f32 %v2108_v54, %v2100_v10  ;;  %v2112_v53 = vadd.f32 %v2108_v54, %v2101_v48  ;;  %v2113_v61 = vadd.f32 %v2108_v54, %v2102_v41 }
 0x383   : > { %v2114_v46 = vadd.f32 %v2108_v54, %v2103_v60  ;;  %v2115_v5 = vadd.f32 %v2108_v54, %v2104_v0  ;;  %v2116_v49 = vadd.f32 %v2108_v54, %v2105_v55 }
 0x384   : > { %v2117_v18 = vmul.f32 0.01, %v2110_v42  ;;  %v2118_v34 = vmul.f32 0.01, %v2111_v52  ;;  %v2119_v62 = vmul.f32 0.01, %v2112_v53 }
 0x385   : > { %v2120_v31 = vmul.f32 0.01, %v2113_v61  ;;  %v2121_v35 = vmul.f32 0.01, %v2114_v46  ;;  %v2122_v11 = vmul.f32 0.01, %v2115_v5 }
 0x386   : > { %v2123_v7 = vmul.f32 0.01, %v2116_v49  ;;  %v2124_v58 = vmax.f32 %v2110_v42, %v2117_v18  ;;  %v2125_v3 = vmax.f32 %v2111_v52, %v2118_v34  ;;  %v2126_v59 = vmax.f32 %v2112_v53, %v2119_v62 }
 0x387   : > { %v2127_v23 = vmax.f32 %v2113_v61, %v2120_v31  ;;  %v2128_v47 = vmax.f32 %v2114_v46, %v2121_v35  ;;  %v2129_v2 = vmax.f32 %v2115_v5, %v2122_v11 }
 0x388   : > { %v2130_v32 = vmax.f32 %v2116_v49, %v2123_v7  ;;  %v2414_v12 = vpack.c.bf16 %v2125_v3, %v2124_v58 }
 0x389   : > { %v2415_v29 = vpack.c.bf16 %v2127_v23, %v2126_v59  ;;  %v2416_v22 = vpack.c.bf16 %v2129_v2, %v2128_v47 }
 0x38a   : > { %v2417_v30 = vpack.c.bf16 %v2130_v32, %v2130_v32  ;;  %2160 = vst [vmem:[%s255_s12] sm:$0xff] %v2414_v12 }
 0x38b   : > { %2161 = vst [vmem:[%s255_s12 + $0x8] sm:$0xff] %v2415_v29  ;;  %2162 = vst [vmem:[%s255_s12 + $0x10] sm:$0xff] %v2416_v22 }
 0x38c   : > { %2163 = vst [vmem:[%s255_s12 + $0x18] sm:$0xf] %v2417_v30 }
 0x38d   : > { %2575 = shalt.err (!%p2572_p3)
}
 0x38e   : > { %s2576_s21 = scalar_lea.hbm %s3534_s25, 448  ;;  %s2580_s24 = scalar_lea.hbm %s3586_s4, 896 }
 0x38f   : > { %p2577_p5 = scmp.ne.s32.totalorder %s3534_s25, %s2576_s21  ;;  %p2581_p7 = scmp.lt.s32.totalorder %s3534_s25, %s3586_s4 }
 0x390   : > { %p2582_p10 = scmp.lt.s32.totalorder %s2580_s24, %s2576_s21 }
 0x391   : > { %p2578_p6 = pnand %p2577_p5, %p2750_p9 }
 0x392   : > { %p2583_p13 = por %p2582_p10, %p2581_p7 }
 0x393   : > { %p2579_p4 = pneg %p2578_p6 }
 0x395   : > { %p2584_p8 = pnand %p2583_p13, %p2579_p4 }
 0x397   : > { %2587 = shalt.err (!%p2584_p8)
}
 0x398   : > { %2425 = dma.vmem_to_hbm [thread:$0]  (%p2750_p9), %s3536_s13, 448, %s3534_s25, %s2165_s18  }
 0x399 PF: > { %s2193_s11 = sand.u32 1, %s2622_s15   ;;  %p3672_p11 = scmp.ne.s32.totalorder %s3624_s30, 0 }
 0x39a   : > { %p3673_p12 = scmp.ge.s32.totalorder %s2642_s20, 2  ;;  %s2194_s12 = scalar_lea.sflag [#allocation5], %s2193_s11 }
 0x39c   : > { %p2432_p0 = pnand %p3673_p12, %p3672_p11 }
 0x39e   : > { %p2433_p1 = pneg %p2432_p0 }
 0x3a0   : > { %2617 = dma.done.wait (%p2433_p1), %s2194_s12, 448  }
 0x3a1   : > { %2619 = vsyncadd (%p2433_p1), %s2194_s12, 4294966848  ;;  %s20_s20 = sadd.s32 1, %s2642_s20   ;;  %s3674_s15 = smov %s2626_s16 }
 0x3a2   : > { %p17_p2 = scmp.ge.s32.totalorder %s20_s20, 4   ;;  %s3675_s16 = smov %s2630_s17 }
 0x3a3   : > { %s3676_s17 = smov %s2755_s29  ;;  %s3677_s18 = smov %s2638_s19 }
 0x3a4   : > { %s3678_s19 = smov %s3680_s23  ;;  %19 = sbr.rel (!%p17_p2) target bundleno = 6 (0x6), region = 87 }
 0x3a9   :  { %2199 = vsyncpa [#allocation4], 1 }
 0x3aa   :  { %2201 = vsyncpa [#allocation4 + $0x1], 1 }
 0x3ab   :  { %2202 = vsyncpa [#allocation5], 1 }
 0x3ac   :  { %2204 = vsyncpa [#allocation5 + $0x1], 1 }

</bundles_post_ra>
